<compile_context>
chip_gen: v7x
topology: tpu7x:2x2x1
jax: 0.10.0
libtpu: 0.0.40
codegen_flags: <defaults>
</compile_context>

<pallas_src>
import functools

import jax
import jax.numpy as jnp
from jax.experimental import pallas as pl
from jax.experimental.pallas import tpu as pltpu

_LANE = 128


def _convstem_kernel(x_ref, w_ref, b_ref, g_ref, beta_ref, o_ref, *,
                     eps, e_true, compute_dtype):
    # x_ref:    (1, C, tn)     NCHW feature slab (one batch element, one token tile)
    # w_ref:    (C, E_pad)     1x1-conv weight, out-channels last, zero-padded to 128 lanes
    # b_ref:    (1, E_pad)     conv bias      (zero-padded)
    # g_ref:    (1, E_pad)     LayerNorm gamma (zero-padded)
    # beta_ref: (1, E_pad)     LayerNorm beta  (zero-padded)
    # o_ref:    (1, tn, E_pad)
    x_cn = x_ref[0]                                  # (C, tn)
    # On-chip (XLU) transpose instead of an HBM round-trip in the wrapper.
    x_nc = jnp.transpose(x_cn)                       # (tn, C), f32
    w = w_ref[...]                                   # (C, E_pad)
    if compute_dtype is not None:
        x_nc = x_nc.astype(compute_dtype)
        w = w.astype(compute_dtype)

    # 1x1 conv == per-token matmul over channels (MXU), f32 accumulation.
    y = jnp.dot(x_nc, w, preferred_element_type=jnp.float32)      # (tn, E_pad)
    y = y + b_ref[...]

    # LayerNorm over the *true* embed_dim; padded lanes of y are exactly zero
    # (zero weight columns + zero bias), so use the true divisor and mask the
    # centered values before squaring (numerically identical to two-pass LN).
    lane = jax.lax.broadcasted_iota(jnp.int32, y.shape, 1)
    valid = lane < e_true
    inv_e = 1.0 / e_true
    mean = jnp.sum(y, axis=-1, keepdims=True) * inv_e
    centered = jnp.where(valid, y - mean, 0.0)
    var = jnp.sum(centered * centered, axis=-1, keepdims=True) * inv_e
    y_n = centered * jax.lax.rsqrt(var + eps)
    out = y_n * g_ref[...] + beta_ref[...]           # padded lanes stay 0 (gamma=beta=0)

    o_ref[0] = out.astype(o_ref.dtype)


def _pick_token_tile(n):
    # Largest 128-multiple divisor of N, capped at 512 (keeps double-buffered
    # (C, tn) f32 blocks < ~8 MiB even for C=2048 -> safe under v7x's 32 MiB scoped VMEM).
    for t in (512, 256, 128):
        if n % t == 0:
            return t
    return n  # ragged feature maps (e.g. 7x7 -> N=49): full extent, still legal


def conv_stem_forward(feat_nchw, conv_w, conv_b, ln_gamma, ln_beta, *,
                      eps=1e-6, compute_dtype=None):
    """Post-backbone ConvStem: 1x1 conv + flatten(2).transpose(1,2) + LayerNorm.

    feat_nchw: [B, C, H, W] backbone feature map (float32)
    conv_w:    [E, C] (or [E, C, 1, 1]) 1x1-conv weight
    conv_b, ln_gamma, ln_beta: [E]
    compute_dtype: dtype of the MXU matmul inputs (jnp.bfloat16 recommended on v6e/v7x);
                   None keeps f32 (v5e / accuracy reference). LayerNorm is always f32.
    returns:   [B, H*W, E]
    """
    if conv_w.ndim == 4:
        conv_w = conv_w[:, :, 0, 0]
    B, C, H, W = feat_nchw.shape
    E = conv_w.shape[0]
    N = H * W
    E_pad = ((E + _LANE - 1) // _LANE) * _LANE
    pad = E_pad - E

    tn = _pick_token_tile(N)
    grid = (B, N // tn)

    # NCHW -> (B, C, N) is a pure reshape (no data movement). The channel<->token
    # transpose happens on-chip inside the kernel.
    feat_bcn = feat_nchw.reshape(B, C, N)

    f32 = jnp.float32
    w_ce = jnp.pad(jnp.transpose(conv_w).astype(f32), ((0, 0), (0, pad)))   # (C, E_pad)
    b_p = jnp.pad(conv_b.astype(f32), (0, pad)).reshape(1, E_pad)
    g_p = jnp.pad(ln_gamma.astype(f32), (0, pad)).reshape(1, E_pad)
    beta_p = jnp.pad(ln_beta.astype(f32), (0, pad)).reshape(1, E_pad)

    kernel = functools.partial(_convstem_kernel, eps=eps, e_true=E,
                               compute_dtype=compute_dtype)

    out_padded = pl.pallas_call(
        kernel,
        out_shape=jax.ShapeDtypeStruct((B, N, E_pad), feat_nchw.dtype),
        grid_spec=pltpu.PrefetchScalarGridSpec(
            num_scalar_prefetch=0,
            grid=grid,
            in_specs=[
                # Token tile straight out of the NCHW feature map.
                pl.BlockSpec((1, C, tn), lambda b, j: (b, 0, j)),
                # Params: constant index maps -> fetched once, stay VMEM-resident.
                pl.BlockSpec((C, E_pad), lambda b, j: (0, 0)),
                pl.BlockSpec((1, E_pad), lambda b, j: (0, 0)),
                pl.BlockSpec((1, E_pad), lambda b, j: (0, 0)),
                pl.BlockSpec((1, E_pad), lambda b, j: (0, 0)),
            ],
            out_specs=pl.BlockSpec((1, tn, E_pad), lambda b, j: (b, j, 0)),
        ),
        compiler_params=pltpu.CompilerParams(
            dimension_semantics=("parallel", "parallel"),
        ),
    )(feat_bcn, w_ce, b_p, g_p, beta_p)

    # Drop the lane padding (padded columns are exactly zero).
    return out_padded[:, :, :E]


def _reference(feat_nchw, conv_w, conv_b, ln_gamma, ln_beta, eps=1e-6):
    B, C, H, W = feat_nchw.shape
    y = jnp.einsum("bchw,ec->bhwe", feat_nchw, conv_w).reshape(B, H * W, -1) + conv_b
    mean = jnp.mean(y, axis=-1, keepdims=True)
    var = jnp.mean((y - mean) ** 2, axis=-1, keepdims=True)
    return (y - mean) / jnp.sqrt(var + eps) * ln_gamma + ln_beta


if __name__ == "__main__":
    # Backbone feature-map stand-in [B, C_in, H, W]; embed_dim=49 matches the module default.
    # (Real module: C_in = 2048 for Res50 / 1024 for dense121; small C_in here for the test.)
    B, C_in, H, W = 2, 128, 32, 32
    embed_dim = 49

    key = jax.random.PRNGKey(0)
    k_x, k_w, k_b, k_g, k_beta = jax.random.split(key, 5)

    feat = jax.random.normal(k_x, (B, C_in, H, W), dtype=jnp.float32)
    conv_w = jax.random.normal(k_w, (embed_dim, C_in), dtype=jnp.float32) * 0.05
    conv_b = jax.random.normal(k_b, (embed_dim,), dtype=jnp.float32) * 0.05
    ln_gamma = jnp.ones((embed_dim,), dtype=jnp.float32) \
        + 0.01 * jax.random.normal(k_g, (embed_dim,), dtype=jnp.float32)
    ln_beta = 0.01 * jax.random.normal(k_beta, (embed_dim,), dtype=jnp.float32)

    ref = _reference(feat, conv_w, conv_b, ln_gamma, ln_beta)

    # f32 matmul-input path (v5e default / accuracy reference).
    out = conv_stem_forward(feat, conv_w, conv_b, ln_gamma, ln_beta)
    out = jax.block_until_ready(out)
    assert out.shape == (B, H * W, embed_dim), out.shape
    assert jnp.allclose(out, ref, atol=1e-4, rtol=1e-4), \
        float(jnp.max(jnp.abs(out - ref)))

    # bf16 matmul-input path (preferred on v6e / v7x MXU); accumulation + LayerNorm stay f32.
    out_bf16 = conv_stem_forward(feat, conv_w, conv_b, ln_gamma, ln_beta,
                                 compute_dtype=jnp.bfloat16)
    out_bf16 = jax.block_until_ready(out_bf16)
    assert out_bf16.shape == (B, H * W, embed_dim), out_bf16.shape
    assert jnp.allclose(out_bf16, ref, atol=1e-1, rtol=1e-1), \
        float(jnp.max(jnp.abs(out_bf16 - ref)))

    print("KERNEL_OK")
</pallas_src>

<mosaic_0001>
module attributes {stable_mosaic.version = 11 : i64} {
  func.func @_convstem_kernel(%arg0: i32, %arg1: i32, %arg2: memref<1x128x512xf32, #tpu.memory_space<vmem>>, %arg3: memref<128x128xf32, #tpu.memory_space<vmem>>, %arg4: memref<1x128xf32, #tpu.memory_space<vmem>>, %arg5: memref<1x128xf32, #tpu.memory_space<vmem>>, %arg6: memref<1x128xf32, #tpu.memory_space<vmem>>, %arg7: memref<1x512x128xf32, #tpu.memory_space<vmem>>) attributes {dimension_semantics = [#tpu.dimension_semantics<parallel>, #tpu.dimension_semantics<parallel>], iteration_bounds = array<i64: 2, 2>, scalar_prefetch = 0 : i64, scratch_operands = 0 : i64, tpu.core_type = #tpu.core_type<tc>, window_params = [{transform_indices = @transform_0, window_bounds = array<i64: 1, 128, 512>}, {pipeline_mode = #tpu.pipeline_mode<synchronous>, transform_indices = @transform_1, window_bounds = array<i64: 128, 128>}, {pipeline_mode = #tpu.pipeline_mode<synchronous>, transform_indices = @transform_2, window_bounds = array<i64: 1, 128>}, {pipeline_mode = #tpu.pipeline_mode<synchronous>, transform_indices = @transform_3, window_bounds = array<i64: 1, 128>}, {pipeline_mode = #tpu.pipeline_mode<synchronous>, transform_indices = @transform_4, window_bounds = array<i64: 1, 128>}, {transform_indices = @transform_5, window_bounds = array<i64: 1, 512, 128>}]} {
    %c0 = arith.constant 0 : index
    %c0_0 = arith.constant 0 : index
    %c0_1 = arith.constant 0 : index
    %0 = vector.load %arg2[%c0, %c0_0, %c0_1] : memref<1x128x512xf32, #tpu.memory_space<vmem>>, vector<1x128x512xf32>
    %1 = vector.shape_cast %0 : vector<1x128x512xf32> to vector<128x512xf32>
    %2 = tpu.transpose %1, [1, 0] : vector<128x512xf32> -> vector<512x128xf32>
    %c0_2 = arith.constant 0 : index
    %c0_3 = arith.constant 0 : index
    %3 = vector.load %arg3[%c0_2, %c0_3] : memref<128x128xf32, #tpu.memory_space<vmem>>, vector<128x128xf32>
    %cst = arith.constant dense<0.000000e+00> : vector<512x128xf32>
    %4 = tpu.matmul %2, %3, %cst {dimension_numbers = #tpu.dot_dimension_numbers<[1], [0], [0], [1], [0, 0, 1, 1], [], []>} : vector<512x128xf32>, vector<128x128xf32>, vector<512x128xf32> -> vector<512x128xf32>
    %c0_4 = arith.constant 0 : index
    %c0_5 = arith.constant 0 : index
    %5 = vector.load %arg4[%c0_4, %c0_5] : memref<1x128xf32, #tpu.memory_space<vmem>>, vector<1x128xf32>
    %6 = vector.broadcast %5 : vector<1x128xf32> to vector<512x128xf32>
    %7 = arith.addf %4, %6 : vector<512x128xf32>
    %8 = tpu.iota {dimensions = array<i32: 1>} : vector<512x128xi32>
    %c49_i32 = arith.constant 49 : i32
    %9 = vector.broadcast %c49_i32 : i32 to vector<512x128xi32>
    %10 = arith.cmpi slt, %8, %9 : vector<512x128xi32>
    %cst_6 = arith.constant dense<0.000000e+00> : vector<512xf32>
    %11 = vector.multi_reduction <add>, %7, %cst_6 [1] : vector<512x128xf32> to vector<512xf32>
    %12 = vector.shape_cast %11 : vector<512xf32> to vector<512x1xf32>
    %cst_7 = arith.constant 0.0204081628 : f32
    %13 = vector.broadcast %cst_7 : f32 to vector<512x1xf32>
    %14 = arith.mulf %12, %13 : vector<512x1xf32>
    %15 = vector.broadcast %14 : vector<512x1xf32> to vector<512x128xf32>
    %16 = arith.subf %7, %15 : vector<512x128xf32>
    %cst_8 = arith.constant 0.000000e+00 : f32
    %17 = vector.broadcast %cst_8 : f32 to vector<512x128xf32>
    %18 = arith.select %10, %16, %17 : vector<512x128xi1>, vector<512x128xf32>
    %19 = arith.mulf %18, %18 : vector<512x128xf32>
    %cst_9 = arith.constant dense<0.000000e+00> : vector<512xf32>
    %20 = vector.multi_reduction <add>, %19, %cst_9 [1] : vector<512x128xf32> to vector<512xf32>
    %21 = vector.shape_cast %20 : vector<512xf32> to vector<512x1xf32>
    %cst_10 = arith.constant 0.0204081628 : f32
    %22 = vector.broadcast %cst_10 : f32 to vector<512x1xf32>
    %23 = arith.mulf %21, %22 : vector<512x1xf32>
    %cst_11 = arith.constant 9.99999997E-7 : f32
    %24 = vector.broadcast %cst_11 : f32 to vector<512x1xf32>
    %25 = arith.addf %23, %24 : vector<512x1xf32>
    %26 = math.rsqrt %25 : vector<512x1xf32>
    %27 = vector.broadcast %26 : vector<512x1xf32> to vector<512x128xf32>
    %28 = arith.mulf %18, %27 : vector<512x128xf32>
    %c0_12 = arith.constant 0 : index
    %c0_13 = arith.constant 0 : index
    %29 = vector.load %arg5[%c0_12, %c0_13] : memref<1x128xf32, #tpu.memory_space<vmem>>, vector<1x128xf32>
    %30 = vector.broadcast %29 : vector<1x128xf32> to vector<512x128xf32>
    %31 = arith.mulf %28, %30 : vector<512x128xf32>
    %c0_14 = arith.constant 0 : index
    %c0_15 = arith.constant 0 : index
    %32 = vector.load %arg6[%c0_14, %c0_15] : memref<1x128xf32, #tpu.memory_space<vmem>>, vector<1x128xf32>
    %33 = vector.broadcast %32 : vector<1x128xf32> to vector<512x128xf32>
    %34 = arith.addf %31, %33 : vector<512x128xf32>
    %c0_16 = arith.constant 0 : index
    %c0_17 = arith.constant 0 : index
    %c0_18 = arith.constant 0 : index
    %35 = vector.load %arg7[%c0_16, %c0_17, %c0_18] : memref<1x512x128xf32, #tpu.memory_space<vmem>>, vector<1x512x128xf32>
    %36 = vector.shape_cast %35 : vector<1x512x128xf32> to vector<512x128xf32>
    %37 = vector.shape_cast %34 : vector<512x128xf32> to vector<1x512x128xf32>
    tpu.vector_store %arg7[%c0_16, %c0_17, %c0_18], %37 {strides = array<i32>} : memref<1x512x128xf32, #tpu.memory_space<vmem>>, vector<1x512x128xf32>,
    return
  }
  func.func @transform_0(%arg0: i32, %arg1: i32) -> (i32, i32, i32) {
    %c0_i32 = arith.constant 0 : i32
    %c0_i32_0 = arith.constant 0 : i32
    return %arg0, %c0_i32, %arg1 : i32, i32, i32
  }
  func.func @transform_1(%arg0: i32, %arg1: i32) -> (i32, i32) {
    %c0_i32 = arith.constant 0 : i32
    %c0_i32_0 = arith.constant 0 : i32
    %c0_i32_1 = arith.constant 0 : i32
    return %c0_i32, %c0_i32_0 : i32, i32
  }
  func.func @transform_2(%arg0: i32, %arg1: i32) -> (i32, i32) {
    %c0_i32 = arith.constant 0 : i32
    %c0_i32_0 = arith.constant 0 : i32
    %c0_i32_1 = arith.constant 0 : i32
    return %c0_i32, %c0_i32_0 : i32, i32
  }
  func.func @transform_3(%arg0: i32, %arg1: i32) -> (i32, i32) {
    %c0_i32 = arith.constant 0 : i32
    %c0_i32_0 = arith.constant 0 : i32
    %c0_i32_1 = arith.constant 0 : i32
    return %c0_i32, %c0_i32_0 : i32, i32
  }
  func.func @transform_4(%arg0: i32, %arg1: i32) -> (i32, i32) {
    %c0_i32 = arith.constant 0 : i32
    %c0_i32_0 = arith.constant 0 : i32
    %c0_i32_1 = arith.constant 0 : i32
    return %c0_i32, %c0_i32_0 : i32, i32
  }
  func.func @transform_5(%arg0: i32, %arg1: i32) -> (i32, i32, i32) {
    %c0_i32 = arith.constant 0 : i32
    %c0_i32_0 = arith.constant 0 : i32
    return %arg0, %arg1, %c0_i32 : i32, i32, i32
  }
}

</mosaic_0001>

<bundles_post_ra>
// kernel: tpu_custom_call.1
= control target key start
LH: loop header
LB: loop body
LE: loop exit
PB: predicated region body
PF: predicated region fallthrough
CT: control target
= control target key end

     0   :  { %s4226_s0 = inlined_call_operand.hbm [shape: f32[2,128,1024], index: 0, kind: input, shape index: {}]   ;;  %s4227_s1 = inlined_call_operand.hbm [shape: f32[128,128], index: 1, kind: input, shape index: {}]   ;;  %s4228_s2 = inlined_call_operand.vmem [shape: f32[1,128], index: 2, kind: input, shape index: {}]   ;;  %s4229_s3 = inlined_call_operand.vmem [shape: f32[1,128], index: 3, kind: input, shape index: {}]   ;;  %s4230_s4 = inlined_call_operand.vmem [shape: f32[1,128], index: 4, kind: input, shape index: {}]   ;;  %s4231_s5 = inlined_call_operand.hbm [shape: f32[2,1024,128], index: 5, kind: output, shape index: {}]  }
   0x1   :  { %4276 = sst [smem:[#allocation34_spill]] %s4227_s1 }
   0x2   :  { %4277 = sst [smem:[#allocation35_spill]] %s4231_s5 }
   0x3   :  { %10 = vsyncpa [#allocation3], 0 }
   0x4   :  { %12 = vsyncpa [#allocation3 + $0x1], 0 }
   0x5   :  { %13 = vsyncpa [#allocation6], 0 }
   0x6   :  { %14 = vsyncpa [#allocation4], 0 }
   0x7   :  { %16 = vsyncpa [#allocation4 + $0x1], 0  ;;  %s2901_s18 = smov 0   ;;  %s2903_s19 = smov 0  }
   0x8   :  { %s2905_s20 = smov 0   ;;  %s2907_s21 = smov 0  }
   0x9   :  { %s2909_s22 = smov 0   ;;  %s2911_s23 = smov 0  }
   0xa   :  { %s2913_s24 = smov 0   ;;  %s2915_s25 = smov 0  }
   0xb LB: > { %4278 = sst [smem:[#allocation11_spill]] %s2831_s18  ;;  %s1971_s26 = sadd.s32 4294967295, %s2859_s25   ;;  %s2859_s25 = sphi %s2915_s25, %s22_s25   ;;  %s2855_s24 = sphi %s2913_s24, %s4372_s24   ;;  %s2851_s23 = sphi %s2911_s23, %s4371_s23   ;;  %s2847_s22 = sphi %s2909_s22, %s4370_s22   ;;  %s2843_s21 = sphi %s2907_s21, %s4365_s21   ;;  %s2839_s20 = sphi %s2905_s20, %s4369_s20   ;;  %s2835_s19 = sphi %s2903_s19, %s4368_s19   ;;  %s2831_s18 = sphi %s2901_s18, %s4367_s18  }
   0xc   : > { %4279 = sst [smem:[#allocation12_spill]] %s2851_s23  ;;  %s1972_s27 = sadd.s32 4294967294, %s2859_s25  }
   0xd   : > { %4280 = sst [smem:[#allocation13_spill]] %s2859_s25  ;;  %p50_p0 = scmp.ne.s32.totalorder %s2839_s20, %s2835_s19 }
   0xe   : > { %p51_p1 = scmp.eq.s32.totalorder %s2859_s25, 0  ;;  %p56_p2 = scmp.ne.s32.totalorder %s2835_s19, %s2831_s18 }
   0xf   : > { %p2949_p3 = scmp.eq.s32.totalorder %s1971_s26, 0  ;;  %p166_p4 = scmp.eq.s32.totalorder %s1971_s26, 3 }
  0x10   : > { %p2953_p5 = por %p51_p1, %p50_p0  ;;  %p172_p6 = scmp.eq.s32.totalorder %s1972_s27, 3 }
  0x11   : > { %s4281_s29 = scalar_select %p2949_p3, 1, 0 }
  0x12   : > { %p2959_p7 = por %p2949_p3, %p56_p2  ;;  %p2963_p8 = por %p166_p4, %p50_p0 }
  0x13   : > { %p2967_p9 = por %p172_p6, %p56_p2  ;;  %p1973_p10 = scmp.ge.s32.totalorder %s2859_s25, 1 }
  0x14   : > { %s4283_s6 = scalar_select %p2959_p7, 1, 0 }
  0x15   : > { %s4284_s7 = scalar_select %p2963_p8, 1, 0 }
  0x16   : > { %s4285_s8 = scalar_select %p2967_p9, 1, 0 }
  0x17   : > { %p179_p11 = scmp.lt.s32.totalorder %s2859_s25, 5  ;;  %s2861_s10 = smov [#allocation5]  }
  0x18   : > { %4286 = sst [smem:[#allocation14_spill]] %s4285_s8  ;;  %s191_s11 = sshll.u32 %s2861_s10, 4  ;;  %s192_s11 = int_to_ptr.vmem [resolvable:$true] %s191_s11 }
  0x19   : > { %p2973_p12 = pnand %p1973_p10, %p179_p11  ;;  %p2270_p0 = scmp.lt.s32.totalorder %s2859_s25, 4 }
  0x1a   : > { %s4290_s1 = sld [smem:[#allocation34_spill]] }
  0x1b   : > { %s4287_s9 = scalar_select %p2973_p12, 1, 0 }
  0x1c   : > { %p2257_p13 = pneg %p2973_p12  ;;  %p2988_p2 = pnand %p2270_p0, %p2953_p5 }
  0x1e   : > { %p2982_p1 = pnand %p2257_p13, %p2949_p3 }
  0x1f   : > { %s4289_s13 = scalar_select %p2988_p2, 1, 0 }
  0x20   : > { %s2699_s16 = scalar_lea.hbm %s4290_s1, 2048  ;;  %p2701_p6 = pneg %p2982_p1 }
  0x21   : > { %p2700_p4 = scmp.ne.s32.totalorder %s4290_s1, %s2699_s16  ;;  %p2706_p13 = scmp.lt.u32.totalorder %s2699_s16, %s4290_s1 }
  0x23   : > { %p2702_p10 = pnand %p2701_p6, %p2700_p4 }
  0x25   : > { %p2703_p11 = pneg %p2702_p10 }
  0x27   : > { %p2708_p5 = pnand %p2706_p13, %p2703_p11 }
  0x29   : > { %2711 = shalt.err (!%p2708_p5)
}
  0x2a   : > { %s2712_s30 = scalar_lea.vmem %s192_s11, 2048  ;;  %p2720_p3 = scmp.lt.s32.totalorder %s192_s11, %s192_s11 }
  0x2b   : > { %p2713_p0 = scmp.ne.s32.totalorder %s192_s11, %s2712_s30  ;;  %p2721_p7 = scmp.lt.s32.totalorder %s2712_s30, %s2712_s30 }
  0x2d   : > { %p2715_p9 = pnand %p2713_p0, %p2701_p6  ;;  %p2722_p12 = por %p2721_p7, %p2720_p3 }
  0x2f   : > { %p2716_p8 = pneg %p2715_p9 }
  0x31   : > { %p2723_p2 = pnand %p2722_p12, %p2716_p8 }
  0x33   : > { %2726 = shalt.err (!%p2723_p2)
}
  0x34   : > { %s2862_s14 = smov 128   ;;  %s2863_s15 = smov 8  }
  0x35   : > { %2260 = dma.hbm_to_vmem [thread:$0]  (!%p2982_p1), %s4290_s1, 2048, %s192_s11, [#allocation6], %s2862_s14, %s2862_s14, %s2863_s15  }
  0x36   : > { %s31_s26 = sadd.s32 1, %s2851_s23  ;;  %s34_s27 = sadd.s32 1, %s2855_s24 }
  0x37   : > { %p32_p3 = scmp.ge.s32.totalorder %s31_s26, 2  ;;  %s214_s10 = sand.u32 1, %s2839_s20  }
  0x38   : > { %s1977_s30 = sshll.u32 %s2851_s23, 2  ;;  %s1976_s8 = sshll.u32 %s214_s10, 9 }
  0x39   : > { %s4374_s26 = smov (%p32_p3, %s31_s26), 0  ;;  %s4376_s27 = smov (!%p32_p3, %s34_s27), %s2855_s24 }
  0x3a   : > { %4291 = sst [smem:[#allocation15_spill]] %s4374_s26  ;;  %s39_s28 = ssub.s32 %s2851_s23, %s4374_s26 }
  0x3b   : > { %p36_p7 = scmp.ge.s32.totalorder %s4376_s27, 2  ;;  %s1978_s12 = sshll.u32 %s2855_s24, 7 }
  0x3c   : > { %s224_s11 = sadd.s32 %s1978_s12, %s1977_s30  ;;  %s218_s14 = scalar_lea.vmem [#allocation2], %s1976_s8 }
  0x3d   : > { %s4378_s27 = smov (%p36_p7, %s4376_s27), 0  ;;  %s227_s15 = sshll.u32 %s218_s14, 4  ;;  %s3027_s15 = int_to_ptr.vmem [resolvable:$true] %s227_s15 }
  0x3e   : > { %s38_s16 = ssub.s32 %s2855_s24, %s4378_s27  ;;  %s1979_s17 = sshll.u32 %s224_s11, 7 }
  0x3f   : > { %s40_s1 = sor.u32 %s39_s28, %s38_s16  ;;  %s3025_s5 = scalar_lea.hbm %s4226_s0, %s1979_s17 }
  0x40   : > { %p41_p8 = scmp.eq.s32.totalorder %s40_s1, 0  ;;  %s4292_s26 = sadd.s32 1, %s2839_s20 }
  0x41   : > { %s3034_s8 = scalar_lea.sflag [#allocation3], %s214_s10  ;;  %s2727_s30 = scalar_lea.hbm %s3025_s5, 8192 }
  0x42   : > { %s3032_s23 = scalar_select %p41_p8, %s2839_s20, %s4292_s26  }
  0x43   : > { %p2728_p9 = scmp.ne.s32.totalorder %s3025_s5, %s2727_s30  ;;  %p4293_p12 = scmp.ne.s32.totalorder %s4289_s13, 0 }
  0x44   : > { %s2732_s28 = scalar_lea.hbm %s4226_s0, 32768  ;;  %p2733_p6 = scmp.lt.u32.totalorder %s3025_s5, %s4226_s0 }
  0x45   : > { %p2729_p1 = pneg %p4293_p12  ;;  %p2734_p10 = scmp.lt.u32.totalorder %s2732_s28, %s2727_s30 }
  0x46   : > { %p2736_p13 = scmp.lt.u32.totalorder %s2727_s30, %s3025_s5 }
  0x47   : > { %p2730_p2 = pnand %p2729_p1, %p2728_p9  ;;  %p2735_p11 = por %p2734_p10, %p2733_p6 }
  0x49   : > { %p2731_p4 = pneg %p2730_p2  ;;  %p2737_p5 = por %p2736_p13, %p2735_p11 }
  0x4b   : > { %p2738_p0 = pnand %p2737_p5, %p2731_p4 }
  0x4d   : > { %2741 = shalt.err (!%p2738_p0)
}
  0x4e   : > { %s2742_s26 = scalar_lea.vmem %s3027_s15, 8192  ;;  %s2864_s10 = smov [#allocation2]  }
  0x4f   : > { %p2743_p3 = scmp.ne.s32.totalorder %s3027_s15, %s2742_s26  ;;  %s2747_s11 = sshll.u32 %s2864_s10, 4  ;;  %s2748_s11 = int_to_ptr.vmem [resolvable:$false] %s2747_s11 }
  0x50   : > { %s2749_s14 = scalar_lea.vmem %s2748_s11, 16384  ;;  %p2750_p9 = scmp.lt.s32.totalorder %s3027_s15, %s2748_s11 }
  0x51   : > { %p2745_p7 = pnand %p2743_p3, %p2729_p1  ;;  %p2751_p2 = scmp.lt.s32.totalorder %s2749_s14, %s2742_s26 }
  0x53   : > { %p2746_p8 = pneg %p2745_p7  ;;  %p2752_p6 = por %p2751_p2, %p2750_p9 }
  0x55   : > { %p2753_p10 = pnand %p2752_p6, %p2746_p8 }
  0x57   : > { %2756 = shalt.err (!%p2753_p10)
}
  0x58   : > { %s2865_s16 = smov 1024   ;;  %s2866_s17 = smov 512  }
  0x59   : > { %s2867_s30 = smov 32   ;;  %p4294_p1 = scmp.ne.s32.totalorder %s4287_s9, 0 }
  0x5a   : > { %2264 = dma.hbm_to_vmem [thread:$0]  (!%p4293_p12), %s3025_s5, 8192, %s3027_s15, %s3034_s8, %s2865_s16, %s2866_s17, %s2867_s30  }
  0x5b   : > { %239 = sbr.rel (%p4294_p1) target bundleno = 917 (0x395), region = 40 }
  0x62   : > { %s3065_s18 = sand.u32 1, %s2835_s19   ;;  %p4295_p4 = scmp.ne.s32.totalorder %s4283_s6, 0 }
  0x63   : > { %s1981_s25 = sshll.u32 %s3065_s18, 9  ;;  %s242_s28 = scalar_lea.sflag [#allocation3], %s3065_s18 }
  0x64   : > { %s3071_s1 = scalar_lea.vmem [#allocation2], %s1981_s25 }
  0x65   : > { %2818 = dma.done.wait (%p4295_p4), %s242_s28, 8192  }
  0x66   : > { %2820 = vsyncadd (%p4295_p4), %s242_s28, 4294959104  ;;  %p4296_p12 = scmp.ne.s32.totalorder %s4281_s29, 0 }
  0x68   : > { %2822 = dma.done.wait (%p4296_p12), [#allocation6], 2048  }
  0x69   : > { %2824 = vsyncadd (%p4296_p12), [#allocation6], 4294965248  ;;  %v278_v0 = vld [vmem:[%s3071_s1] sm:$0xff]  ;;  %v280_v1 = vld [vmem:[%s3071_s1 + $0x10] sm:$0xff]  ;;  %s3925_s8 = scalar_lea.vmem [#allocation7], %s1981_s25  ;;  %s1988_s14 = sshll.u32 %s2843_s21, 6 }
  0x6a   : > { %v282_v2 = vld [vmem:[%s3071_s1 + $0x20] sm:$0xff]  ;;  %v2345_v3 = vpack.i.bf16 %v280_v1, %v278_v0  ;;  %v284_v4 = vld [vmem:[%s3071_s1 + $0x30] sm:$0xff]  ;;  %v279_v11 = vld [vmem:[%s3071_s1 + $0x8] sm:$0xff]  ;;  %s1989_s16 = sshll.u32 %s2847_s22, 7  ;;  %s1871_s22 = sshll.u32 %s3925_s8, 4  ;;  %s4171_s22 = int_to_ptr.vmem [resolvable:$true] %s1871_s22 }
  0x6b   : > { %v2347_v5 = vpack.i.bf16 %v284_v4, %v282_v2  ;;  %v286_v6 = vld [vmem:[%s3071_s1 + $0x40] sm:$0xff]  ;;  %v288_v7 = vld [vmem:[%s3071_s1 + $0x50] sm:$0xff]  ;;  %v281_v13 = vld [vmem:[%s3071_s1 + $0x18] sm:$0xff]  ;;  %s1868_s17 = sadd.s32 %s1989_s16, %s1988_s14  ;;  %s4359_s28 = sld [smem:[#allocation35_spill]] }
  0x6c   : > { %2346 = vxpose.xlu0.b32.start [1/16] %v2345_v3, 128  ;;  %v2349_v8 = vpack.i.bf16 %v288_v7, %v286_v6  ;;  %v290_v9 = vld [vmem:[%s3071_s1 + $0x60] sm:$0xff]  ;;  %v292_v10 = vld [vmem:[%s3071_s1 + $0x70] sm:$0xff]  ;;  %v283_v14 = vld [vmem:[%s3071_s1 + $0x28] sm:$0xff]  ;;  %v2457_v18 = vpack.i.bf16 %v281_v13, %v279_v11  ;;  %s1990_s21 = sshll.u32 %s1868_s17, 7  ;;  %s1856_s5 = scalar_lea.sflag [#allocation4], %s3065_s18 }
  0x6d   : > { %v2351_v12 = vpack.i.bf16 %v292_v10, %v290_v9  ;;  %v285_v15 = vld [vmem:[%s3071_s1 + $0x38] sm:$0xff]  ;;  %v294_v16 = vld [vmem:[%s3071_s1 + $0x80] sm:$0xff]  ;;  %v296_v17 = vld [vmem:[%s3071_s1 + $0x90] sm:$0xff]  ;;  %s2757_s29 = scalar_lea.vmem %s4171_s22, 8192  ;;  %p4360_p13 = scmp.ne.s32.totalorder %s4284_s7, 0 }
  0x6e   : > { %2458 = vxpose.xlu1.b32.start [1/16] %v2457_v18, 128  ;;  %v2459_v19 = vpack.i.bf16 %v285_v15, %v283_v14  ;;  %v2353_v20 = vpack.i.bf16 %v296_v17, %v294_v16  ;;  %v287_v21 = vld [vmem:[%s3071_s1 + $0x48] sm:$0xff]  ;;  %v289_v22 = vld [vmem:[%s3071_s1 + $0x58] sm:$0xff]  ;;  %v298_v23 = vld [vmem:[%s3071_s1 + $0xa0] sm:$0xff]  ;;  %p2758_p11 = scmp.ne.s32.totalorder %s4171_s22, %s2757_s29  ;;  %s2868_s6 = smov [#allocation7]  }
  0x6f   : > { %v300_v24 = vld [vmem:[%s3071_s1 + $0xb0] sm:$0xff]  ;;  %v470_v25 = vld [vmem:[#allocation5] sm:$0xff]  ;;  %v471_v26 = vld [vmem:[#allocation5 + $0x8] sm:$0xff]  ;;  %v2461_v28 = vpack.i.bf16 %v289_v22, %v287_v21  ;;  %s2761_s9 = sshll.u32 %s2868_s6, 4  ;;  %s2762_s9 = int_to_ptr.vmem [resolvable:$false] %s2761_s9 }
  0x70   : > { %2348 = vxpose.xlu0.b32.cont [2/16] %v2347_v5, 128  ;;  %v302_v27 = vld [vmem:[%s3071_s1 + $0xc0] sm:$0xff]  ;;  %v2201_v29 = vpack.c.bf16 %v471_v26, %v470_v25  ;;  %v472_v30 = vld [vmem:[#allocation5 + $0x10] sm:$0xff]  ;;  %v2355_v31 = vpack.i.bf16 %v300_v24, %v298_v23  ;;  %v291_v32 = vld [vmem:[%s3071_s1 + $0x68] sm:$0xff]  ;;  %p2759_p5 = pnand %p2758_p11, %p4360_p13  ;;  %s2763_s13 = scalar_lea.vmem %s2762_s9, 16384 }
  0x71   : > { %v293_v33 = vld [vmem:[%s3071_s1 + $0x78] sm:$0xff]  ;;  %v304_v35 = vld [vmem:[%s3071_s1 + $0xd0] sm:$0xff]  ;;  %v474_v37 = vld [vmem:[#allocation5 + $0x20] sm:$0xff]  ;;  %p2764_p3 = scmp.lt.s32.totalorder %s4171_s22, %s2762_s9  ;;  %p2765_p7 = scmp.lt.s32.totalorder %s2763_s13, %s2757_s29 }
  0x72   : > { %2460 = vxpose.xlu1.b32.cont [2/16] %v2459_v19, 128  ;;  %v473_v34 = vld [vmem:[#allocation5 + $0x18] sm:$0xff]  ;;  %2202 = vmatprep.subr.bf16.mxu0 %v2201_v29  ;;  %v475_v38 = vld [vmem:[#allocation5 + $0x28] sm:$0xff]  ;;  %v2463_v39 = vpack.i.bf16 %v293_v33, %v291_v32  ;;  %v2357_v42 = vpack.i.bf16 %v304_v35, %v302_v27  ;;  %v476_v44 = vld [vmem:[#allocation5 + $0x30] sm:$0xff]  ;;  %p2760_p0 = pneg %p2759_p5 }
  0x73   : > { %2233 = vmatprep.subr.bf16.mxu1 %v2201_v29  ;;  %v2205_v36 = vpack.c.bf16 %v473_v34, %v472_v30  ;;  %2204 = vmatpush3.bf16.msra.mxu0 %v2201_v29  ;;  %v295_v40 = vld [vmem:[%s3071_s1 + $0x88] sm:$0xff]  ;;  %v2209_v41 = vpack.c.bf16 %v475_v38, %v474_v37  ;;  %v297_v43 = vld [vmem:[%s3071_s1 + $0x98] sm:$0xff]  ;;  %v306_v46 = vld [vmem:[%s3071_s1 + $0xe0] sm:$0xff]  ;;  %p2766_p8 = por %p2765_p7, %p2764_p3 }
  0x74   : > { %2350 = vxpose.xlu0.b32.cont [3/16] %v2349_v8, 128  ;;  %2241 = vmatpush3.bf16.msra.mxu1 %v2201_v29  ;;  %v477_v45 = vld [vmem:[#allocation5 + $0x38] sm:$0xff]  ;;  %v308_v47 = vld [vmem:[%s3071_s1 + $0xf0] sm:$0xff]  ;;  %v2465_v48 = vpack.i.bf16 %v297_v43, %v295_v40  ;;  %v299_v49 = vld [vmem:[%s3071_s1 + $0xa8] sm:$0xff] }
  0x75   : > { %2206 = vmatprep.subr.bf16.mxu0 %v2205_v36  ;;  %2234 = vmatprep.subr.bf16.mxu1 %v2205_v36  ;;  %v2213_v50 = vpack.c.bf16 %v477_v45, %v476_v44  ;;  %v2359_v51 = vpack.i.bf16 %v308_v47, %v306_v46  ;;  %v301_v52 = vld [vmem:[%s3071_s1 + $0xb8] sm:$0xff]  ;;  %v478_v53 = vld [vmem:[#allocation5 + $0x40] sm:$0xff]  ;;  %v479_v54 = vld [vmem:[#allocation5 + $0x48] sm:$0xff]  ;;  %p2767_p9 = pnand %p2766_p8, %p2760_p0 }
  0x76   : > { %2462 = vxpose.xlu1.b32.cont [3/16] %v2461_v28, 128  ;;  %v310_v55 = vld [vmem:[%s3071_s1 + $0x100] sm:$0xff]  ;;  %v312_v56 = vld [vmem:[%s3071_s1 + $0x110] sm:$0xff]  ;;  %v2467_v57 = vpack.i.bf16 %v301_v52, %v299_v49  ;;  %v303_v58 = vld [vmem:[%s3071_s1 + $0xc8] sm:$0xff]  ;;  %v2217_v59 = vpack.c.bf16 %v479_v54, %v478_v53 }
  0x77   : > { %2208 = vmatpush3.bf16.msra.mxu0 %v2205_v36  ;;  %v2361_v60 = vpack.i.bf16 %v312_v56, %v310_v55  ;;  %v305_v61 = vld [vmem:[%s3071_s1 + $0xd8] sm:$0xff]  ;;  %v480_v62 = vld [vmem:[#allocation5 + $0x50] sm:$0xff]  ;;  %v314_v0 = vld [vmem:[%s3071_s1 + $0x120] sm:$0xff] }
  0x78   : > { %2352 = vxpose.xlu0.b32.cont [4/16] %v2351_v12, 128  ;;  %2242 = vmatpush3.bf16.msra.mxu1 %v2205_v36  ;;  %v481_v63 = vld [vmem:[#allocation5 + $0x58] sm:$0xff]  ;;  %v316_v1 = vld [vmem:[%s3071_s1 + $0x130] sm:$0xff]  ;;  %v2469_v2 = vpack.i.bf16 %v305_v61, %v303_v58  ;;  %v307_v3 = vld [vmem:[%s3071_s1 + $0xe8] sm:$0xff] }
  0x79   : > { %2210 = vmatprep.subr.bf16.mxu0 %v2209_v41  ;;  %2235 = vmatprep.subr.bf16.mxu1 %v2209_v41  ;;  %v2221_v4 = vpack.c.bf16 %v481_v63, %v480_v62  ;;  %v2363_v5 = vpack.i.bf16 %v316_v1, %v314_v0  ;;  %v309_v6 = vld [vmem:[%s3071_s1 + $0xf8] sm:$0xff]  ;;  %v482_v7 = vld [vmem:[#allocation5 + $0x60] sm:$0xff]  ;;  %v483_v8 = vld [vmem:[#allocation5 + $0x68] sm:$0xff] }
  0x7a   : > { %2464 = vxpose.xlu1.b32.cont [4/16] %v2463_v39, 128  ;;  %v318_v9 = vld [vmem:[%s3071_s1 + $0x140] sm:$0xff]  ;;  %v320_v10 = vld [vmem:[%s3071_s1 + $0x150] sm:$0xff]  ;;  %v2471_v11 = vpack.i.bf16 %v309_v6, %v307_v3  ;;  %v311_v12 = vld [vmem:[%s3071_s1 + $0x108] sm:$0xff]  ;;  %v2225_v13 = vpack.c.bf16 %v483_v8, %v482_v7 }
  0x7b   : > { %2212 = vmatpush3.bf16.msra.mxu0 %v2209_v41  ;;  %v2365_v14 = vpack.i.bf16 %v320_v10, %v318_v9  ;;  %v313_v15 = vld [vmem:[%s3071_s1 + $0x118] sm:$0xff]  ;;  %v484_v16 = vld [vmem:[#allocation5 + $0x70] sm:$0xff]  ;;  %v322_v18 = vld [vmem:[%s3071_s1 + $0x160] sm:$0xff] }
  0x7c   : > { %2354 = vxpose.xlu0.b32.cont [5/16] %v2353_v20, 128  ;;  %2243 = vmatpush3.bf16.msra.mxu1 %v2209_v41  ;;  %v485_v17 = vld [vmem:[#allocation5 + $0x78] sm:$0xff]  ;;  %v324_v19 = vld [vmem:[%s3071_s1 + $0x170] sm:$0xff]  ;;  %v2473_v20 = vpack.i.bf16 %v313_v15, %v311_v12  ;;  %v315_v23 = vld [vmem:[%s3071_s1 + $0x128] sm:$0xff] }
  0x7d   : > { %2214 = vmatprep.subr.bf16.mxu0 %v2213_v50  ;;  %2236 = vmatprep.subr.bf16.mxu1 %v2213_v50  ;;  %v2229_v21 = vpack.c.bf16 %v485_v17, %v484_v16  ;;  %v2367_v22 = vpack.i.bf16 %v324_v19, %v322_v18  ;;  %v317_v24 = vld [vmem:[%s3071_s1 + $0x138] sm:$0xff]  ;;  %v326_v25 = vld [vmem:[%s3071_s1 + $0x180] sm:$0xff]  ;;  %v328_v26 = vld [vmem:[%s3071_s1 + $0x190] sm:$0xff] }
  0x7e   : > { %2466 = vxpose.xlu1.b32.cont [5/16] %v2465_v48, 128  ;;  %v2475_v27 = vpack.i.bf16 %v317_v24, %v315_v23  ;;  %v2369_v28 = vpack.i.bf16 %v328_v26, %v326_v25  ;;  %v319_v29 = vld [vmem:[%s3071_s1 + $0x148] sm:$0xff]  ;;  %v321_v30 = vld [vmem:[%s3071_s1 + $0x158] sm:$0xff]  ;;  %v332_v32 = vld [vmem:[%s3071_s1 + $0x1b0] sm:$0xff] }
  0x7f   : > { %2216 = vmatpush3.bf16.msra.mxu0 %v2213_v50  ;;  %v2477_v33 = vpack.i.bf16 %v321_v30, %v319_v29  ;;  %v323_v35 = vld [vmem:[%s3071_s1 + $0x168] sm:$0xff]  ;;  %v325_v36 = vld [vmem:[%s3071_s1 + $0x178] sm:$0xff]  ;;  %v334_v37 = vld [vmem:[%s3071_s1 + $0x1c0] sm:$0xff] }
  0x80   : > { %2356 = vxpose.xlu0.b32.cont [6/16] %v2355_v31, 128  ;;  %2244 = vmatpush3.bf16.msra.mxu1 %v2213_v50  ;;  %v330_v31 = vld [vmem:[%s3071_s1 + $0x1a0] sm:$0xff]  ;;  %v336_v38 = vld [vmem:[%s3071_s1 + $0x1d0] sm:$0xff]  ;;  %v2479_v39 = vpack.i.bf16 %v325_v36, %v323_v35  ;;  %v327_v41 = vld [vmem:[%s3071_s1 + $0x188] sm:$0xff] }
  0x81   : > { %2218 = vmatprep.subr.bf16.mxu0 %v2217_v59  ;;  %2237 = vmatprep.subr.bf16.mxu1 %v2217_v59  ;;  %v2371_v34 = vpack.i.bf16 %v332_v32, %v330_v31  ;;  %v2373_v40 = vpack.i.bf16 %v336_v38, %v334_v37  ;;  %v338_v43 = vld [vmem:[%s3071_s1 + $0x1e0] sm:$0xff]  ;;  %v340_v44 = vld [vmem:[%s3071_s1 + $0x1f0] sm:$0xff]  ;;  %v331_v47 = vld [vmem:[%s3071_s1 + $0x1a8] sm:$0xff] }
  0x82   : > { %2468 = vxpose.xlu1.b32.cont [6/16] %v2467_v57, 128  ;;  %v2375_v46 = vpack.i.bf16 %v340_v44, %v338_v43  ;;  %v333_v48 = vld [vmem:[%s3071_s1 + $0x1b8] sm:$0xff]  ;;  %v335_v50 = vld [vmem:[%s3071_s1 + $0x1c8] sm:$0xff] }
  0x83   : > { %2220 = vmatpush3.bf16.msra.mxu0 %v2217_v59  ;;  %v2483_v49 = vpack.i.bf16 %v333_v48, %v331_v47  ;;  %v339_v53 = vld [vmem:[%s3071_s1 + $0x1e8] sm:$0xff]  ;;  %v341_v54 = vld [vmem:[%s3071_s1 + $0x1f8] sm:$0xff] }
  0x84   : > { %2358 = vxpose.xlu0.b32.cont [7/16] %v2357_v42, 128  ;;  %2245 = vmatpush3.bf16.msra.mxu1 %v2217_v59  ;;  %v329_v42 = vld [vmem:[%s3071_s1 + $0x198] sm:$0xff]  ;;  %v2487_v55 = vpack.i.bf16 %v341_v54, %v339_v53 }
  0x85   : > { %2222 = vmatprep.subr.bf16.mxu0 %v2221_v4  ;;  %2238 = vmatprep.subr.bf16.mxu1 %v2221_v4  ;;  %v2481_v45 = vpack.i.bf16 %v329_v42, %v327_v41 }
  0x86   : > { %2470 = vxpose.xlu1.b32.cont [7/16] %v2469_v2, 128 }
  0x87   : > { %2224 = vmatpush3.bf16.msra.mxu0 %v2221_v4 }
  0x88   : > { %2360 = vxpose.xlu0.b32.cont [8/16] %v2359_v51, 128  ;;  %2246 = vmatpush3.bf16.msra.mxu1 %v2221_v4  ;;  %v337_v51 = vld [vmem:[%s3071_s1 + $0x1d8] sm:$0xff]  ;;  %s4169_s1 = scalar_lea.hbm %s4359_s28, %s1990_s21 }
  0x89   : > { %2226 = vmatprep.subr.bf16.mxu0 %v2225_v13  ;;  %2239 = vmatprep.subr.bf16.mxu1 %v2225_v13  ;;  %v2485_v52 = vpack.i.bf16 %v337_v51, %v335_v50 }
  0x8a   : > { %2472 = vxpose.xlu1.b32.cont [8/16] %v2471_v11, 128 }
  0x8b   : > { %2228 = vmatpush3.bf16.msra.mxu0 %v2225_v13 }
  0x8c   : > { %2362 = vxpose.xlu0.b32.cont [9/16] %v2361_v60, 128  ;;  %2247 = vmatpush3.bf16.msra.mxu1 %v2225_v13 }
  0x8d   : > { %2230 = vmatprep.subr.bf16.mxu0 %v2229_v21  ;;  %2240 = vmatprep.subr.bf16.mxu1 %v2229_v21 }
  0x8e   : > { %2474 = vxpose.xlu1.b32.cont [9/16] %v2473_v20, 128 }
  0x8f   : > { %2232 = vmatpush3.bf16.msra.mxu0 %v2229_v21 }
  0x90   : > { %2364 = vxpose.xlu0.b32.cont [10/16] %v2363_v5, 128  ;;  %2248 = vmatpush3.bf16.msra.mxu1 %v2229_v21 }
  0x92   : > { %2476 = vxpose.xlu1.b32.cont [10/16] %v2475_v27, 128 }
  0x94   : > { %2366 = vxpose.xlu0.b32.cont [11/16] %v2365_v14, 128 }
  0x96   : > { %2478 = vxpose.xlu1.b32.cont [11/16] %v2477_v33, 128 }
  0x98   : > { %2368 = vxpose.xlu0.b32.cont [12/16] %v2367_v22, 128 }
  0x9a   : > { %2480 = vxpose.xlu1.b32.cont [12/16] %v2479_v39, 128 }
  0x9c   : > { %2370 = vxpose.xlu0.b32.cont [13/16] %v2369_v28, 128 }
  0x9e   : > { %2482 = vxpose.xlu1.b32.cont [13/16] %v2481_v45, 128 }
  0xa0   : > { %2372 = vxpose.xlu0.b32.cont [14/16] %v2371_v34, 128 }
  0xa2   : > { %2484 = vxpose.xlu1.b32.cont [14/16] %v2483_v49, 128 }
  0xa4   : > { %2374 = vxpose.xlu0.b32.cont [15/16] %v2373_v40, 128 }
  0xa6   : > { %2486 = vxpose.xlu1.b32.cont [15/16] %v2485_v52, 128 }
  0xa8   : > { %2376 = vxpose.xlu0.b32.end [16/16] %v2375_v46, 128 }
  0xaa   : > { %2488 = vxpose.xlu1.b32.end [16/16] %v2487_v55, 128 }
  0xec   : > { %v2377_v56 = vpop.trf.xlu0 }
  0xed   : > { %v2378_v57 = vunpack.i.l.bf16 %v2377_v56  ;;  %v2381_v58 = vunpack.i.h.bf16 %v2377_v56 }
  0xee   : > { %v3145_v1 = vpop.trf.xlu1 }
  0xef   : > { %2105 = vmatprep.mubr.f32.mxu0 %v2378_v57  ;;  %2153 = vmatprep.mubr.f32.mxu1 %v2381_v58  ;;  %v2490_v51 = vunpack.i.l.bf16 %v3145_v1  ;;  %v2493_v52 = vunpack.i.h.bf16 %v3145_v1 }
  0xf0   : > { %v2382_v59 = vpop.trf.xlu0 }
  0xf1   : > { %v2383_v60 = vunpack.i.l.bf16 %v2382_v59  ;;  %v2386_v61 = vunpack.i.h.bf16 %v2382_v59 }
  0xf2   : > { %v3147_v5 = vpop.trf.xlu1 }
  0xf3   : > { %2106 = vmatmul.mubr.f32.vlgmr.msra.gmra.mrb[0].mxu0 %v2383_v60  ;;  %2154 = vmatmul.mubr.f32.vlgmr.msra.gmra.mrb[0].mxu1 %v2386_v61  ;;  %v2495_v55 = vunpack.i.l.bf16 %v3147_v5  ;;  %v2498_v56 = vunpack.i.h.bf16 %v3147_v5 }
  0xf4   : > { %v2387_v62 = vpop.trf.xlu0 }
  0xf5   : > { %v2388_v63 = vunpack.i.l.bf16 %v2387_v62  ;;  %v2391_v0 = vunpack.i.h.bf16 %v2387_v62 }
  0xf6   : > { %v3149_v9 = vpop.trf.xlu1 }
  0xf7   : > { %2108 = vmatprep.mubr.f32.mxu0 %v2388_v63  ;;  %2156 = vmatprep.mubr.f32.mxu1 %v2391_v0  ;;  %v2500_v58 = vunpack.i.l.bf16 %v3149_v9  ;;  %v2503_v59 = vunpack.i.h.bf16 %v3149_v9 }
  0xf8   : > { %v2392_v2 = vpop.trf.xlu0 }
  0xf9   : > { %v2393_v3 = vunpack.i.l.bf16 %v2392_v2  ;;  %v2396_v4 = vunpack.i.h.bf16 %v2392_v2 }
  0xfa   : > { %v3151_v13 = vpop.trf.xlu1 }
  0xfb   : > { %2109 = vmatmul.mubr.f32.gmra.mrb[2].mxu0 %v2393_v3  ;;  %2157 = vmatmul.mubr.f32.gmra.mrb[2].mxu1 %v2396_v4  ;;  %v2505_v60 = vunpack.i.l.bf16 %v3151_v13  ;;  %v2508_v61 = vunpack.i.h.bf16 %v3151_v13 }
  0xfc   : > { %v2397_v6 = vpop.trf.xlu0 }
  0xfd   : > { %v2398_v7 = vunpack.i.l.bf16 %v2397_v6  ;;  %v2401_v8 = vunpack.i.h.bf16 %v2397_v6 }
  0xfe   : > { %v3153_v17 = vpop.trf.xlu1 }
  0xff   : > { %2111 = vmatprep.mubr.f32.mxu0 %v2398_v7  ;;  %2159 = vmatprep.mubr.f32.mxu1 %v2401_v8  ;;  %v2510_v63 = vunpack.i.l.bf16 %v3153_v17  ;;  %v2513_v0 = vunpack.i.h.bf16 %v3153_v17 }
 0x100   : > { %v2402_v10 = vpop.trf.xlu0 }
 0x101   : > { %v2403_v11 = vunpack.i.l.bf16 %v2402_v10  ;;  %v2406_v12 = vunpack.i.h.bf16 %v2402_v10 }
 0x102   : > { %v3155_v21 = vpop.trf.xlu1 }
 0x103   : > { %2112 = vmatmul.mubr.f32.gmra.mrb[4].mxu0 %v2403_v11  ;;  %2160 = vmatmul.mubr.f32.gmra.mrb[4].mxu1 %v2406_v12  ;;  %v2515_v1 = vunpack.i.l.bf16 %v3155_v21  ;;  %v2518_v2 = vunpack.i.h.bf16 %v3155_v21 }
 0x104   : > { %v2407_v14 = vpop.trf.xlu0 }
 0x105   : > { %v2408_v15 = vunpack.i.l.bf16 %v2407_v14  ;;  %v2411_v16 = vunpack.i.h.bf16 %v2407_v14 }
 0x106   : > { %v3157_v25 = vpop.trf.xlu1 }
 0x107   : > { %2114 = vmatprep.mubr.f32.mxu0 %v2408_v15  ;;  %2162 = vmatprep.mubr.f32.mxu1 %v2411_v16  ;;  %v2520_v4 = vunpack.i.l.bf16 %v3157_v25  ;;  %v2523_v5 = vunpack.i.h.bf16 %v3157_v25 }
 0x108   : > { %v2412_v18 = vpop.trf.xlu0 }
 0x109   : > { %v2413_v19 = vunpack.i.l.bf16 %v2412_v18  ;;  %v2416_v20 = vunpack.i.h.bf16 %v2412_v18 }
 0x10a   : > { %v3159_v29 = vpop.trf.xlu1 }
 0x10b   : > { %2115 = vmatmul.mubr.f32.gmra.mrb[6].mxu0 %v2413_v19  ;;  %2163 = vmatmul.mubr.f32.gmra.mrb[6].mxu1 %v2416_v20  ;;  %v2525_v6 = vunpack.i.l.bf16 %v3159_v29  ;;  %v2528_v7 = vunpack.i.h.bf16 %v3159_v29 }
 0x10c   : > { %v2417_v22 = vpop.trf.xlu0 }
 0x10d   : > { %v2418_v23 = vunpack.i.l.bf16 %v2417_v22  ;;  %v2421_v24 = vunpack.i.h.bf16 %v2417_v22 }
 0x10e   : > { %v3161_v33 = vpop.trf.xlu1 }
 0x10f   : > { %2117 = vmatprep.mubr.f32.mxu0 %v2418_v23  ;;  %2165 = vmatprep.mubr.f32.mxu1 %v2421_v24  ;;  %v2530_v8 = vunpack.i.l.bf16 %v3161_v33  ;;  %v2533_v9 = vunpack.i.h.bf16 %v3161_v33  ;;  %v3196_v24 = vld [vmem:[%s4228_s2] ss:$0 sm:$0xff] }
 0x110   : > { %v2422_v26 = vpop.trf.xlu0 }
 0x111   : > { %v2423_v27 = vunpack.i.l.bf16 %v2422_v26  ;;  %v2426_v28 = vunpack.i.h.bf16 %v2422_v26 }
 0x112   : > { %v3163_v37 = vpop.trf.xlu1 }
 0x113   : > { %2118 = vmatmul.mubr.f32.gmra.mrb[8].mxu0 %v2423_v27  ;;  %2166 = vmatmul.mubr.f32.gmra.mrb[8].mxu1 %v2426_v28  ;;  %v2535_v10 = vunpack.i.l.bf16 %v3163_v37  ;;  %v2538_v11 = vunpack.i.h.bf16 %v3163_v37 }
 0x114   : > { %v2427_v30 = vpop.trf.xlu0 }
 0x115   : > { %v2428_v31 = vunpack.i.l.bf16 %v2427_v30  ;;  %v2431_v32 = vunpack.i.h.bf16 %v2427_v30 }
 0x116   : > { %v3165_v41 = vpop.trf.xlu1 }
 0x117   : > { %2120 = vmatprep.mubr.f32.mxu0 %v2428_v31  ;;  %2168 = vmatprep.mubr.f32.mxu1 %v2431_v32  ;;  %v2540_v12 = vunpack.i.l.bf16 %v3165_v41  ;;  %v2543_v13 = vunpack.i.h.bf16 %v3165_v41 }
 0x118   : > { %v2432_v34 = vpop.trf.xlu0 }
 0x119   : > { %v2433_v35 = vunpack.i.l.bf16 %v2432_v34  ;;  %v2436_v36 = vunpack.i.h.bf16 %v2432_v34 }
 0x11a   : > { %v3167_v45 = vpop.trf.xlu1 }
 0x11b   : > { %2121 = vmatmul.mubr.f32.gmra.mrb[10].mxu0 %v2433_v35  ;;  %2169 = vmatmul.mubr.f32.gmra.mrb[10].mxu1 %v2436_v36  ;;  %v2545_v14 = vunpack.i.l.bf16 %v3167_v45  ;;  %v2548_v15 = vunpack.i.h.bf16 %v3167_v45 }
 0x11c   : > { %v2437_v38 = vpop.trf.xlu0 }
 0x11d   : > { %v2438_v39 = vunpack.i.l.bf16 %v2437_v38  ;;  %v2441_v40 = vunpack.i.h.bf16 %v2437_v38 }
 0x11e   : > { %v2549_v49 = vpop.trf.xlu1 }
 0x11f   : > { %2123 = vmatprep.mubr.f32.mxu0 %v2438_v39  ;;  %2171 = vmatprep.mubr.f32.mxu1 %v2441_v40  ;;  %v2550_v16 = vunpack.i.l.bf16 %v2549_v49  ;;  %v2553_v17 = vunpack.i.h.bf16 %v2549_v49 }
 0x120   : > { %v2442_v42 = vpop.trf.xlu0 }
 0x121   : > { %v2443_v43 = vunpack.i.l.bf16 %v2442_v42  ;;  %v2446_v44 = vunpack.i.h.bf16 %v2442_v42 }
 0x122   : > { %v2554_v57 = vpop.trf.xlu1 }
 0x123   : > { %2124 = vmatmul.mubr.f32.gmra.mrb[12].mxu0 %v2443_v43  ;;  %2172 = vmatmul.mubr.f32.gmra.mrb[12].mxu1 %v2446_v44  ;;  %v2555_v18 = vunpack.i.l.bf16 %v2554_v57  ;;  %v2558_v19 = vunpack.i.h.bf16 %v2554_v57 }
 0x124   : > { %v2447_v46 = vpop.trf.xlu0 }
 0x125   : > { %v2448_v47 = vunpack.i.l.bf16 %v2447_v46  ;;  %v2451_v48 = vunpack.i.h.bf16 %v2447_v46 }
 0x126   : > { %v2559_v62 = vpop.trf.xlu1 }
 0x127   : > { %2126 = vmatprep.mubr.f32.mxu0 %v2448_v47  ;;  %2174 = vmatprep.mubr.f32.mxu1 %v2451_v48  ;;  %v2560_v20 = vunpack.i.l.bf16 %v2559_v62  ;;  %v2563_v21 = vunpack.i.h.bf16 %v2559_v62 }
 0x128   : > { %v2452_v50 = vpop.trf.xlu0 }
 0x129   : > { %v2453_v53 = vunpack.i.l.bf16 %v2452_v50  ;;  %v2456_v54 = vunpack.i.h.bf16 %v2452_v50 }
 0x12a   : > { %v2564_v3 = vpop.trf.xlu1 }
 0x12b   : > { %2127 = vmatmul.mubr.f32.gmra.mrb[14].mxu0 %v2453_v53  ;;  %2175 = vmatmul.mubr.f32.gmra.mrb[14].mxu1 %v2456_v54  ;;  %v2565_v22 = vunpack.i.l.bf16 %v2564_v3  ;;  %v2568_v23 = vunpack.i.h.bf16 %v2564_v3 }
 0x12c   : > { %2129 = vmatprep.mubr.f32.mxu0 %v2490_v51  ;;  %2177 = vmatprep.mubr.f32.mxu1 %v2493_v52 }
 0x12f   : > { %2130 = vmatmul.mubr.f32.gmra.mrb[16].mxu0 %v2495_v55  ;;  %2178 = vmatmul.mubr.f32.gmra.mrb[16].mxu1 %v2498_v56 }
 0x130   : > { %2132 = vmatprep.mubr.f32.mxu0 %v2500_v58  ;;  %2180 = vmatprep.mubr.f32.mxu1 %v2503_v59 }
 0x133   : > { %2133 = vmatmul.mubr.f32.gmra.mrb[18].mxu0 %v2505_v60  ;;  %2181 = vmatmul.mubr.f32.gmra.mrb[18].mxu1 %v2508_v61 }
 0x134   : > { %2135 = vmatprep.mubr.f32.mxu0 %v2510_v63  ;;  %2183 = vmatprep.mubr.f32.mxu1 %v2513_v0 }
 0x137   : > { %2136 = vmatmul.mubr.f32.gmra.mrb[20].mxu0 %v2515_v1  ;;  %2184 = vmatmul.mubr.f32.gmra.mrb[20].mxu1 %v2518_v2 }
 0x138   : > { %2138 = vmatprep.mubr.f32.mxu0 %v2520_v4  ;;  %2186 = vmatprep.mubr.f32.mxu1 %v2523_v5 }
 0x13b   : > { %2139 = vmatmul.mubr.f32.gmra.mrb[22].mxu0 %v2525_v6  ;;  %2187 = vmatmul.mubr.f32.gmra.mrb[22].mxu1 %v2528_v7 }
 0x13c   : > { %2141 = vmatprep.mubr.f32.mxu0 %v2530_v8  ;;  %2189 = vmatprep.mubr.f32.mxu1 %v2533_v9 }
 0x13f   : > { %2142 = vmatmul.mubr.f32.gmra.mrb[24].mxu0 %v2535_v10  ;;  %2190 = vmatmul.mubr.f32.gmra.mrb[24].mxu1 %v2538_v11 }
 0x140   : > { %2144 = vmatprep.mubr.f32.mxu0 %v2540_v12  ;;  %2192 = vmatprep.mubr.f32.mxu1 %v2543_v13 }
 0x143   : > { %2145 = vmatmul.mubr.f32.gmra.mrb[26].mxu0 %v2545_v14  ;;  %2193 = vmatmul.mubr.f32.gmra.mrb[26].mxu1 %v2548_v15 }
 0x144   : > { %2147 = vmatprep.mubr.f32.mxu0 %v2550_v16  ;;  %2195 = vmatprep.mubr.f32.mxu1 %v2553_v17 }
 0x147   : > { %2148 = vmatmul.mubr.f32.gmra.mrb[28].mxu0 %v2555_v18  ;;  %2196 = vmatmul.mubr.f32.gmra.mrb[28].mxu1 %v2558_v19 }
 0x148   : > { %2150 = vmatprep.mubr.f32.mxu0 %v2560_v20  ;;  %2198 = vmatprep.mubr.f32.mxu1 %v2563_v21 }
 0x14b   : > { %2151 = vmatmul.mubr.f32.gmra.mrb[30].mxu0 %v2565_v22  ;;  %2199 = vmatmul.mubr.f32.gmra.mrb[30].mxu1 %v2568_v23 }
 0x1c6   : > { %v2107_v25 = vpop.f32.mrb[0].mxu0  ;;  %v2155_v26 = vpop.f32.mrb[0].mxu1 }
 0x1c7   : > { %v3199_v27 = vadd.f32 %v2107_v25, %v3196_v24  ;;  %v559_v28 = vpop.f32.mrb[1].mxu0  ;;  %v719_v29 = vpop.f32.mrb[1].mxu1  ;;  %v3207_v31 = vadd.f32 %v2155_v26, %v3196_v24 }
 0x1c8   : > { %v3202_v30 = vadd.f32 %v3196_v24, %v559_v28  ;;  %v3210_v32 = vadd.f32 %v3196_v24, %v719_v29 }
 0x1c9   : > { %883 = vadd.xlane.f32.xlu1 %v3199_v27 }
 0x1ca   : > { %881 = vadd.xlane.f32.xlu0 %v3202_v30 }
 0x1cd   : > { %947 = vadd.xlane.f32.xlu1 %v3207_v31 }
 0x1ce   : > { %v2110_v33 = vpop.f32.mrb[2].mxu0  ;;  %v2158_v34 = vpop.f32.mrb[2].mxu1  ;;  %945 = vadd.xlane.f32.xlu0 %v3210_v32 }
 0x1cf   : > { %v3215_v35 = vadd.f32 %v2110_v33, %v3196_v24  ;;  %v569_v36 = vpop.f32.mrb[3].mxu0  ;;  %v729_v37 = vpop.f32.mrb[3].mxu1  ;;  %v3223_v39 = vadd.f32 %v2158_v34, %v3196_v24 }
 0x1d0   : > { %v3218_v38 = vadd.f32 %v3196_v24, %v729_v37  ;;  %v3227_v42 = vadd.f32 %v3196_v24, %v569_v36 }
 0x1d1   : > { %887 = vadd.xlane.f32.xlu1 %v3215_v35 }
 0x1d2   : > { %949 = vadd.xlane.f32.xlu0 %v3218_v38 }
 0x1d5   : > { %951 = vadd.xlane.f32.xlu1 %v3223_v39 }
 0x1d6   : > { %v2113_v40 = vpop.f32.mrb[4].mxu0  ;;  %v2161_v41 = vpop.f32.mrb[4].mxu1 }
 0x1d7   : > { %v579_v43 = vpop.f32.mrb[5].mxu0  ;;  %v739_v44 = vpop.f32.mrb[5].mxu1  ;;  %v3233_v46 = vadd.f32 %v2113_v40, %v3196_v24  ;;  %v3241_v48 = vadd.f32 %v2161_v41, %v3196_v24 }
 0x1d8   : > { %v3230_v45 = vadd.f32 %v3196_v24, %v579_v43  ;;  %v3238_v47 = vadd.f32 %v3196_v24, %v739_v44 }
 0x1d9   : > { %885 = vadd.xlane.f32.xlu1 %v3227_v42 }
 0x1da   : > { %889 = vadd.xlane.f32.xlu0 %v3230_v45 }
 0x1dd   : > { %891 = vadd.xlane.f32.xlu1 %v3233_v46 }
 0x1de   : > { %v2116_v49 = vpop.f32.mrb[6].mxu0  ;;  %953 = vadd.xlane.f32.xlu0 %v3238_v47  ;;  %v2164_v50 = vpop.f32.mrb[6].mxu1 }
 0x1df   : > { %v589_v51 = vpop.f32.mrb[7].mxu0  ;;  %v749_v52 = vpop.f32.mrb[7].mxu1  ;;  %v3249_v54 = vadd.f32 %v2116_v49, %v3196_v24  ;;  %v3257_v56 = vadd.f32 %v2164_v50, %v3196_v24 }
 0x1e0   : > { %v3246_v53 = vadd.f32 %v3196_v24, %v589_v51  ;;  %v3254_v55 = vadd.f32 %v3196_v24, %v749_v52 }
 0x1e1   : > { %955 = vadd.xlane.f32.xlu1 %v3241_v48 }
 0x1e2   : > { %893 = vadd.xlane.f32.xlu0 %v3246_v53 }
 0x1e5   : > { %895 = vadd.xlane.f32.xlu1 %v3249_v54 }
 0x1e6   : > { %v2119_v57 = vpop.f32.mrb[8].mxu0  ;;  %957 = vadd.xlane.f32.xlu0 %v3254_v55  ;;  %v2167_v58 = vpop.f32.mrb[8].mxu1 }
 0x1e7   : > { %v599_v59 = vpop.f32.mrb[9].mxu0  ;;  %v759_v60 = vpop.f32.mrb[9].mxu1  ;;  %v3265_v62 = vadd.f32 %v2119_v57, %v3196_v24  ;;  %v3273_v0 = vadd.f32 %v2167_v58, %v3196_v24 }
 0x1e8   : > { %v3262_v61 = vadd.f32 %v3196_v24, %v599_v59  ;;  %v3270_v63 = vadd.f32 %v3196_v24, %v759_v60 }
 0x1e9   : > { %959 = vadd.xlane.f32.xlu1 %v3257_v56 }
 0x1ea   : > { %897 = vadd.xlane.f32.xlu0 %v3262_v61 }
 0x1ed   : > { %899 = vadd.xlane.f32.xlu1 %v3265_v62 }
 0x1ee   : > { %v2122_v1 = vpop.f32.mrb[10].mxu0  ;;  %961 = vadd.xlane.f32.xlu0 %v3270_v63  ;;  %v2170_v2 = vpop.f32.mrb[10].mxu1 }
 0x1ef   : > { %v609_v3 = vpop.f32.mrb[11].mxu0  ;;  %v769_v4 = vpop.f32.mrb[11].mxu1  ;;  %v3281_v6 = vadd.f32 %v2122_v1, %v3196_v24  ;;  %v3289_v8 = vadd.f32 %v2170_v2, %v3196_v24 }
 0x1f0   : > { %v3278_v5 = vadd.f32 %v3196_v24, %v609_v3  ;;  %v3286_v7 = vadd.f32 %v3196_v24, %v769_v4 }
 0x1f1   : > { %963 = vadd.xlane.f32.xlu1 %v3273_v0 }
 0x1f2   : > { %901 = vadd.xlane.f32.xlu0 %v3278_v5 }
 0x1f5   : > { %903 = vadd.xlane.f32.xlu1 %v3281_v6 }
 0x1f6   : > { %v2125_v9 = vpop.f32.mrb[12].mxu0  ;;  %965 = vadd.xlane.f32.xlu0 %v3286_v7  ;;  %v2173_v10 = vpop.f32.mrb[12].mxu1 }
 0x1f7   : > { %v619_v11 = vpop.f32.mrb[13].mxu0  ;;  %v779_v12 = vpop.f32.mrb[13].mxu1  ;;  %v3297_v14 = vadd.f32 %v2125_v9, %v3196_v24  ;;  %v3305_v16 = vadd.f32 %v2173_v10, %v3196_v24 }
 0x1f8   : > { %v3294_v13 = vadd.f32 %v3196_v24, %v619_v11  ;;  %v3302_v15 = vadd.f32 %v3196_v24, %v779_v12 }
 0x1f9   : > { %967 = vadd.xlane.f32.xlu1 %v3289_v8 }
 0x1fa   : > { %905 = vadd.xlane.f32.xlu0 %v3294_v13 }
 0x1fd   : > { %907 = vadd.xlane.f32.xlu1 %v3297_v14 }
 0x1fe   : > { %v2128_v17 = vpop.f32.mrb[14].mxu0  ;;  %969 = vadd.xlane.f32.xlu0 %v3302_v15  ;;  %v2176_v18 = vpop.f32.mrb[14].mxu1 }
 0x1ff   : > { %v629_v19 = vpop.f32.mrb[15].mxu0  ;;  %v789_v20 = vpop.f32.mrb[15].mxu1  ;;  %v3313_v22 = vadd.f32 %v2128_v17, %v3196_v24  ;;  %v3321_v33 = vadd.f32 %v2176_v18, %v3196_v24 }
 0x200   : > { %v3310_v21 = vadd.f32 %v3196_v24, %v629_v19  ;;  %v3318_v23 = vadd.f32 %v3196_v24, %v789_v20 }
 0x201   : > { %971 = vadd.xlane.f32.xlu1 %v3305_v16 }
 0x202   : > { %909 = vadd.xlane.f32.xlu0 %v3310_v21  ;;  %v2131_v25 = vpop.f32.mrb[16].mxu0  ;;  %v2179_v26 = vpop.f32.mrb[16].mxu1 }
 0x203   : > { %v639_v28 = vpop.f32.mrb[17].mxu0  ;;  %v799_v29 = vpop.f32.mrb[17].mxu1  ;;  %v3329_v43 = vadd.f32 %v2131_v25, %v3196_v24  ;;  %v3337_v57 = vadd.f32 %v2179_v26, %v3196_v24 }
 0x204   : > { %v3326_v34 = vadd.f32 %v3196_v24, %v639_v28  ;;  %v3334_v44 = vadd.f32 %v3196_v24, %v799_v29 }
 0x205   : > { %911 = vadd.xlane.f32.xlu1 %v3313_v22 }
 0x206   : > { %973 = vadd.xlane.f32.xlu0 %v3318_v23  ;;  %v2134_v36 = vpop.f32.mrb[18].mxu0  ;;  %v2182_v37 = vpop.f32.mrb[18].mxu1 }
 0x207   : > { %v649_v40 = vpop.f32.mrb[19].mxu0  ;;  %v809_v41 = vpop.f32.mrb[19].mxu1  ;;  %v3345_v3 = vadd.f32 %v2134_v36, %v3196_v24  ;;  %v3353_v17 = vadd.f32 %v2182_v37, %v3196_v24 }
 0x208   : > { %v3342_v58 = vadd.f32 %v3196_v24, %v649_v40  ;;  %v3350_v4 = vadd.f32 %v3196_v24, %v809_v41 }
 0x209   : > { %975 = vadd.xlane.f32.xlu1 %v3321_v33  ;;  %4297 = vst [vmem:[#allocation16_spill] sm:$0xff] %v3345_v3  ;;  %4299 = vst [vmem:[#allocation18_spill] sm:$0xff] %v3353_v17 }
 0x20a   : > { %913 = vadd.xlane.f32.xlu0 %v3326_v34  ;;  %v2137_v49 = vpop.f32.mrb[20].mxu0  ;;  %v2185_v50 = vpop.f32.mrb[20].mxu1  ;;  %4298 = vst [vmem:[#allocation17_spill] sm:$0xff] %v3350_v4 }
 0x20b   : > { %v659_v51 = vpop.f32.mrb[21].mxu0  ;;  %v819_v52 = vpop.f32.mrb[21].mxu1  ;;  %v3361_v28 = vadd.f32 %v2137_v49, %v3196_v24 }
 0x20c   : > { %v3358_v18 = vadd.f32 %v3196_v24, %v659_v51  ;;  %v3366_v29 = vadd.f32 %v3196_v24, %v819_v52  ;;  %v3369_v51 = vadd.f32 %v2185_v50, %v3196_v24 }
 0x20d   : > { %915 = vadd.xlane.f32.xlu1 %v3329_v43  ;;  %4301 = vst [vmem:[#allocation20_spill] sm:$0xff] %v3361_v28 }
 0x20e   : > { %977 = vadd.xlane.f32.xlu0 %v3334_v44  ;;  %v2140_v59 = vpop.f32.mrb[22].mxu0  ;;  %v2188_v60 = vpop.f32.mrb[22].mxu1  ;;  %4300 = vst [vmem:[#allocation19_spill] sm:$0xff] %v3358_v18 }
 0x20f   : > { %v669_v1 = vpop.f32.mrb[23].mxu0  ;;  %v829_v2 = vpop.f32.mrb[23].mxu1  ;;  %v3377_v52 = vadd.f32 %v2140_v59, %v3196_v24 }
 0x210   : > { %v3374_v49 = vadd.f32 %v3196_v24, %v669_v1  ;;  %v3382_v50 = vadd.f32 %v3196_v24, %v829_v2 }
 0x211   : > { %979 = vadd.xlane.f32.xlu1 %v3337_v57 }
 0x212   : > { %917 = vadd.xlane.f32.xlu0 %v3342_v58  ;;  %v2143_v9 = vpop.f32.mrb[24].mxu0  ;;  %v2191_v10 = vpop.f32.mrb[24].mxu1 }
 0x213   : > { %v679_v11 = vpop.f32.mrb[25].mxu0  ;;  %v839_v12 = vpop.f32.mrb[25].mxu1  ;;  %v3393_v59 = vadd.f32 %v2143_v9, %v3196_v24 }
 0x214   : > { %v3390_v1 = vadd.f32 %v3196_v24, %v679_v11  ;;  %v3398_v2 = vadd.f32 %v3196_v24, %v839_v12 }
 0x215   : > { %919 = vadd.xlane.f32.xlu1 %v3345_v3 }
 0x216   : > { %981 = vadd.xlane.f32.xlu0 %v3350_v4  ;;  %v2146_v19 = vpop.f32.mrb[26].mxu0  ;;  %v2194_v20 = vpop.f32.mrb[26].mxu1 }
 0x217   : > { %v689_v25 = vpop.f32.mrb[27].mxu0  ;;  %v849_v26 = vpop.f32.mrb[27].mxu1  ;;  %v3409_v9 = vadd.f32 %v2146_v19, %v3196_v24 }
 0x218   : > { %v3406_v11 = vadd.f32 %v3196_v24, %v689_v25  ;;  %v3414_v12 = vadd.f32 %v3196_v24, %v849_v26 }
 0x219   : > { %983 = vadd.xlane.f32.xlu1 %v3353_v17 }
 0x21a   : > { %921 = vadd.xlane.f32.xlu0 %v3358_v18  ;;  %v2149_v36 = vpop.f32.mrb[28].mxu0  ;;  %v2197_v37 = vpop.f32.mrb[28].mxu1 }
 0x21b   : > { %v699_v40 = vpop.f32.mrb[29].mxu0  ;;  %v859_v41 = vpop.f32.mrb[29].mxu1  ;;  %v3425_v19 = vadd.f32 %v2149_v36, %v3196_v24 }
 0x21c   : > { %v3422_v25 = vadd.f32 %v3196_v24, %v699_v40  ;;  %v3430_v26 = vadd.f32 %v3196_v24, %v859_v41 }
 0x21d   : > { %923 = vadd.xlane.f32.xlu1 %v3361_v28  ;;  %v3385_v28 = vadd.f32 %v2188_v60, %v3196_v24  ;;  %v3401_v60 = vadd.f32 %v2191_v10, %v3196_v24  ;;  %v3417_v10 = vadd.f32 %v2194_v20, %v3196_v24  ;;  %4303 = vst [vmem:[#allocation22_spill] sm:$0xff] %v3425_v19 }
 0x21e   : > { %985 = vadd.xlane.f32.xlu0 %v3366_v29  ;;  %v2152_v17 = vpop.f32.mrb[30].mxu0  ;;  %v2200_v4 = vpop.f32.mrb[30].mxu1  ;;  %4302 = vst [vmem:[#allocation21_spill] sm:$0xff] %v3422_v25  ;;  %4304 = vst [vmem:[#allocation23_spill] sm:$0xff] %v3430_v26  ;;  %v3433_v20 = vadd.f32 %v2197_v37, %v3196_v24 }
 0x21f   : > { %v709_v18 = vpop.f32.mrb[31].mxu0  ;;  %v869_v3 = vpop.f32.mrb[31].mxu1  ;;  %v3441_v36 = vadd.f32 %v2152_v17, %v3196_v24  ;;  %v3449_v37 = vadd.f32 %v2200_v4, %v3196_v24 }
 0x220   : > { %4305 = vst [vmem:[#allocation24_spill] sm:$0xff] %v3433_v20  ;;  %v3438_v40 = vadd.f32 %v3196_v24, %v709_v18  ;;  %v3446_v41 = vadd.f32 %v3196_v24, %v869_v3  ;;  %v878_v18 = vlaneseq }
 0x221   : > { %987 = vadd.xlane.f32.xlu1 %v3369_v51  ;;  %4307 = vst [vmem:[#allocation26_spill] sm:$0xff] %v3441_v36  ;;  %4309 = vst [vmem:[#allocation28_spill] sm:$0xff] %v3449_v37 }
 0x222   : > { %925 = vadd.xlane.f32.xlu0 %v3374_v49  ;;  %4306 = vst [vmem:[#allocation25_spill] sm:$0xff] %v3438_v40  ;;  %4308 = vst [vmem:[#allocation27_spill] sm:$0xff] %v3446_v41 }
 0x225   : > { %927 = vadd.xlane.f32.xlu1 %v3377_v52 }
 0x226   : > { %989 = vadd.xlane.f32.xlu0 %v3382_v50 }
 0x229   : > { %991 = vadd.xlane.f32.xlu1 %v3385_v28 }
 0x22a   : > { %929 = vadd.xlane.f32.xlu0 %v3390_v1 }
 0x22d   : > { %931 = vadd.xlane.f32.xlu1 %v3393_v59 }
 0x22e   : > { %993 = vadd.xlane.f32.xlu0 %v3398_v2 }
 0x231   : > { %995 = vadd.xlane.f32.xlu1 %v3401_v60 }
 0x232   : > { %933 = vadd.xlane.f32.xlu0 %v3406_v11 }
 0x235   : > { %935 = vadd.xlane.f32.xlu1 %v3409_v9 }
 0x236   : > { %997 = vadd.xlane.f32.xlu0 %v3414_v12 }
 0x239   : > { %999 = vadd.xlane.f32.xlu1 %v3417_v10 }
 0x23a   : > { %937 = vadd.xlane.f32.xlu0 %v3422_v25 }
 0x23d   : > { %939 = vadd.xlane.f32.xlu1 %v3425_v19 }
 0x23e   : > { %1001 = vadd.xlane.f32.xlu0 %v3430_v26  ;;  %v3454_v26 = vand.u32 127, %v878_v18 }
 0x240   : > { %vm880_vm0 = vcmp.lt.s32.totalorder %v3454_v26, 49 }
 0x241   : > { %1003 = vadd.xlane.f32.xlu1 %v3433_v20 }
 0x242   : > { %941 = vadd.xlane.f32.xlu0 %v3438_v40 }
 0x245   : > { %943 = vadd.xlane.f32.xlu1 %v3441_v36 }
 0x246   : > { %1005 = vadd.xlane.f32.xlu0 %v3446_v41 }
 0x249   : > { %1007 = vadd.xlane.f32.xlu1 %v3449_v37 }
 0x256   : > { %v884_v17 = vpop.xlane.xlu1 %883 }
 0x257   : > { %v1010_v19 = vmul.f32 0.020408163, %v884_v17  ;;  %v882_v20 = vpop.xlane.xlu0 %881 }
 0x258   : > { %v1009_v25 = vmul.f32 0.020408163, %v882_v20 }
 0x259   : > { %v1074_v3 = vsub.f32 %v3199_v27, %v1010_v19 }
 0x25a   : > { %v1073_v24 = vsub.f32 %v3202_v30, %v1009_v25  ;;  %v948_v4 = vpop.xlane.xlu1 %947 }
 0x25b   : > { %v1042_v40 = vmul.f32 0.020408163, %v948_v4  ;;  %v946_v36 = vpop.xlane.xlu0 %945  ;;  %v3461_v41 = vsel %vm880_vm0, %v1074_v3, 0.0 }
 0x25c   : > { %v1041_v37 = vmul.f32 0.020408163, %v946_v36  ;;  %v1202_v18 = vmul.f32 %v3461_v41, %v3461_v41  ;;  %v3467_v20 = vsel %vm880_vm0, %v1073_v24, 0.0 }
 0x25d   : > { %v1106_v17 = vsub.f32 %v3207_v31, %v1042_v40  ;;  %v1201_v27 = vmul.f32 %v3467_v20, %v3467_v20 }
 0x25e   : > { %v1105_v30 = vsub.f32 %v3210_v32, %v1041_v37  ;;  %v888_v25 = vpop.xlane.xlu1 %887  ;;  %1267 = vadd.xlane.f32.xlu1 %v1202_v18 }
 0x25f   : > { %v1012_v19 = vmul.f32 0.020408163, %v888_v25  ;;  %1265 = vadd.xlane.f32.xlu0 %v1201_v27  ;;  %v3475_v36 = vsel %vm880_vm0, %v1106_v17, 0.0  ;;  %v950_v40 = vpop.xlane.xlu0 %949 }
 0x260   : > { %v1234_v3 = vmul.f32 %v3475_v36, %v3475_v36  ;;  %v3481_v24 = vsel %vm880_vm0, %v1105_v30, 0.0  ;;  %v1043_v27 = vmul.f32 0.020408163, %v950_v40 }
 0x261   : > { %4310 = vst [vmem:[#allocation29_spill] sm:$0xff] %v3481_v24  ;;  %v1076_v31 = vsub.f32 %v3215_v35, %v1012_v19  ;;  %v1233_v32 = vmul.f32 %v3481_v24, %v3481_v24 }
 0x262   : > { %v952_v37 = vpop.xlane.xlu1 %951  ;;  %1331 = vadd.xlane.f32.xlu1 %v1234_v3 }
 0x263   : > { %v1044_v4 = vmul.f32 0.020408163, %v952_v37  ;;  %1329 = vadd.xlane.f32.xlu0 %v1233_v32  ;;  %v3488_v18 = vsel %vm880_vm0, %v1076_v31, 0.0  ;;  %v1107_v31 = vsub.f32 %v3218_v38, %v1043_v27 }
 0x264   : > { %4311 = vst [vmem:[#allocation30_spill] sm:$0xff] %v3488_v18  ;;  %v1204_v17 = vmul.f32 %v3488_v18, %v3488_v18 }
 0x265   : > { %v1108_v30 = vsub.f32 %v3223_v39, %v1044_v4  ;;  %v3511_v38 = vsel %vm880_vm0, %v1107_v31, 0.0 }
 0x266   : > { %1271 = vadd.xlane.f32.xlu1 %v1204_v17  ;;  %v886_v35 = vpop.xlane.xlu1 %885 }
 0x267   : > { %v1011_v25 = vmul.f32 0.020408163, %v886_v35  ;;  %v890_v19 = vpop.xlane.xlu0 %889  ;;  %v3495_v24 = vsel %vm880_vm0, %v1108_v30, 0.0 }
 0x268   : > { %4312 = vst [vmem:[#allocation31_spill] sm:$0xff] %v3495_v24  ;;  %v1236_v3 = vmul.f32 %v3495_v24, %v3495_v24  ;;  %v1013_v37 = vmul.f32 0.020408163, %v890_v19 }
 0x269   : > { %v1075_v32 = vsub.f32 %v3227_v42, %v1011_v25 }
 0x26a   : > { %1335 = vadd.xlane.f32.xlu1 %v1236_v3  ;;  %v892_v40 = vpop.xlane.xlu1 %891  ;;  %v1077_v30 = vsub.f32 %v3230_v45, %v1013_v37  ;;  %v1235_v45 = vmul.f32 %v3511_v38, %v3511_v38 }
 0x26b   : > { %v1014_v18 = vmul.f32 0.020408163, %v892_v40  ;;  %v954_v39 = vpop.xlane.xlu0 %953  ;;  %v3503_v4 = vsel %vm880_vm0, %v1075_v32, 0.0 }
 0x26c   : > { %v1203_v17 = vmul.f32 %v3503_v4, %v3503_v4  ;;  %v1045_v24 = vmul.f32 0.020408163, %v954_v39  ;;  %v3525_v32 = vsel %vm880_vm0, %v1077_v30, 0.0 }
 0x26d   : > { %v1078_v35 = vsub.f32 %v3233_v46, %v1014_v18 }
 0x26e   : > { %v956_v42 = vpop.xlane.xlu1 %955  ;;  %1269 = vadd.xlane.f32.xlu0 %v1203_v17  ;;  %v1109_v46 = vsub.f32 %v3238_v47, %v1045_v24  ;;  %v1205_v47 = vmul.f32 %v3525_v32, %v3525_v32 }
 0x26f   : > { %v1046_v27 = vmul.f32 0.020408163, %v956_v42  ;;  %v894_v25 = vpop.xlane.xlu0 %893  ;;  %v3515_v19 = vsel %vm880_vm0, %v1078_v35, 0.0 }
 0x270   : > { %v1206_v3 = vmul.f32 %v3515_v19, %v3515_v19  ;;  %v1015_v31 = vmul.f32 0.020408163, %v894_v25  ;;  %v3539_v42 = vsel %vm880_vm0, %v1109_v46, 0.0 }
 0x271   : > { %v1110_v18 = vsub.f32 %v3241_v48, %v1046_v27 }
 0x272   : > { %1275 = vadd.xlane.f32.xlu1 %v1206_v3  ;;  %v896_v37 = vpop.xlane.xlu1 %895  ;;  %1333 = vadd.xlane.f32.xlu0 %v1235_v45  ;;  %v1079_v48 = vsub.f32 %v3246_v53, %v1015_v31  ;;  %v1237_v53 = vmul.f32 %v3539_v42, %v3539_v42 }
 0x273   : > { %v1016_v40 = vmul.f32 0.020408163, %v896_v37  ;;  %v958_v39 = vpop.xlane.xlu0 %957  ;;  %v3529_v17 = vsel %vm880_vm0, %v1110_v18, 0.0 }
 0x274   : > { %v1238_v35 = vmul.f32 %v3529_v17, %v3529_v17  ;;  %v1047_v30 = vmul.f32 0.020408163, %v958_v39  ;;  %v3553_v37 = vsel %vm880_vm0, %v1079_v48, 0.0 }
 0x275   : > { %v1080_v24 = vsub.f32 %v3249_v54, %v1016_v40 }
 0x276   : > { %1339 = vadd.xlane.f32.xlu1 %v1238_v35  ;;  %v960_v27 = vpop.xlane.xlu1 %959  ;;  %1273 = vadd.xlane.f32.xlu0 %v1205_v47  ;;  %v1111_v54 = vsub.f32 %v3254_v55, %v1047_v30  ;;  %v1207_v55 = vmul.f32 %v3553_v37, %v3553_v37 }
 0x277   : > { %v1048_v25 = vmul.f32 0.020408163, %v960_v27  ;;  %v898_v3 = vpop.xlane.xlu0 %897  ;;  %v3543_v45 = vsel %vm880_vm0, %v1080_v24, 0.0 }
 0x278   : > { %v1208_v18 = vmul.f32 %v3543_v45, %v3543_v45  ;;  %v1017_v31 = vmul.f32 0.020408163, %v898_v3  ;;  %v3567_v27 = vsel %vm880_vm0, %v1111_v54, 0.0 }
 0x279   : > { %v1112_v46 = vsub.f32 %v3257_v56, %v1048_v25 }
 0x27a   : > { %1279 = vadd.xlane.f32.xlu1 %v1208_v18  ;;  %v900_v40 = vpop.xlane.xlu1 %899  ;;  %1337 = vadd.xlane.f32.xlu0 %v1237_v53  ;;  %v1081_v56 = vsub.f32 %v3262_v61, %v1017_v31  ;;  %v1239_v61 = vmul.f32 %v3567_v27, %v3567_v27 }
 0x27b   : > { %v1018_v39 = vmul.f32 0.020408163, %v900_v40  ;;  %v962_v35 = vpop.xlane.xlu0 %961  ;;  %v3557_v47 = vsel %vm880_vm0, %v1112_v46, 0.0 }
 0x27c   : > { %v1240_v24 = vmul.f32 %v3557_v47, %v3557_v47  ;;  %v1049_v30 = vmul.f32 0.020408163, %v962_v35  ;;  %v3581_v40 = vsel %vm880_vm0, %v1081_v56, 0.0 }
 0x27d   : > { %v1082_v48 = vsub.f32 %v3265_v62, %v1018_v39 }
 0x27e   : > { %1343 = vadd.xlane.f32.xlu1 %v1240_v24  ;;  %v964_v25 = vpop.xlane.xlu1 %963  ;;  %1277 = vadd.xlane.f32.xlu0 %v1207_v55  ;;  %v1113_v62 = vsub.f32 %v3270_v63, %v1049_v30  ;;  %v1209_v63 = vmul.f32 %v3581_v40, %v3581_v40 }
 0x27f   : > { %v1050_v3 = vmul.f32 0.020408163, %v964_v25  ;;  %v902_v18 = vpop.xlane.xlu0 %901  ;;  %v3571_v53 = vsel %vm880_vm0, %v1082_v48, 0.0 }
 0x280   : > { %v1210_v46 = vmul.f32 %v3571_v53, %v3571_v53  ;;  %v1019_v31 = vmul.f32 0.020408163, %v902_v18  ;;  %v3595_v25 = vsel %vm880_vm0, %v1113_v62, 0.0 }
 0x281   : > { %v1114_v54 = vsub.f32 %v3273_v0, %v1050_v3 }
 0x282   : > { %1283 = vadd.xlane.f32.xlu1 %v1210_v46  ;;  %v904_v39 = vpop.xlane.xlu1 %903  ;;  %1341 = vadd.xlane.f32.xlu0 %v1239_v61  ;;  %v1083_v0 = vsub.f32 %v3278_v5, %v1019_v31  ;;  %v1241_v5 = vmul.f32 %v3595_v25, %v3595_v25 }
 0x283   : > { %v1020_v35 = vmul.f32 0.020408163, %v904_v39  ;;  %v966_v24 = vpop.xlane.xlu0 %965  ;;  %v3585_v55 = vsel %vm880_vm0, %v1114_v54, 0.0 }
 0x284   : > { %v1242_v48 = vmul.f32 %v3585_v55, %v3585_v55  ;;  %v1051_v30 = vmul.f32 0.020408163, %v966_v24  ;;  %v3609_v39 = vsel %vm880_vm0, %v1083_v0, 0.0 }
 0x285   : > { %v1084_v56 = vsub.f32 %v3281_v6, %v1020_v35 }
 0x286   : > { %1347 = vadd.xlane.f32.xlu1 %v1242_v48  ;;  %v968_v3 = vpop.xlane.xlu1 %967  ;;  %1281 = vadd.xlane.f32.xlu0 %v1209_v63  ;;  %v1115_v6 = vsub.f32 %v3286_v7, %v1051_v30  ;;  %v1211_v7 = vmul.f32 %v3609_v39, %v3609_v39 }
 0x287   : > { %v1052_v18 = vmul.f32 0.020408163, %v968_v3  ;;  %v906_v46 = vpop.xlane.xlu0 %905  ;;  %v3599_v61 = vsel %vm880_vm0, %v1084_v56, 0.0 }
 0x288   : > { %v1212_v54 = vmul.f32 %v3599_v61, %v3599_v61  ;;  %v1021_v31 = vmul.f32 0.020408163, %v906_v46  ;;  %v3623_v3 = vsel %vm880_vm0, %v1115_v6, 0.0 }
 0x289   : > { %v1116_v62 = vsub.f32 %v3289_v8, %v1052_v18 }
 0x28a   : > { %1287 = vadd.xlane.f32.xlu1 %v1212_v54  ;;  %v908_v35 = vpop.xlane.xlu1 %907  ;;  %1345 = vadd.xlane.f32.xlu0 %v1241_v5  ;;  %v1085_v8 = vsub.f32 %v3294_v13, %v1021_v31  ;;  %v1243_v13 = vmul.f32 %v3623_v3, %v3623_v3 }
 0x28b   : > { %v1022_v24 = vmul.f32 0.020408163, %v908_v35  ;;  %v970_v48 = vpop.xlane.xlu0 %969  ;;  %v3613_v63 = vsel %vm880_vm0, %v1116_v62, 0.0 }
 0x28c   : > { %v1244_v56 = vmul.f32 %v3613_v63, %v3613_v63  ;;  %v1053_v30 = vmul.f32 0.020408163, %v970_v48  ;;  %v3637_v35 = vsel %vm880_vm0, %v1085_v8, 0.0 }
 0x28d   : > { %v1086_v0 = vsub.f32 %v3297_v14, %v1022_v24 }
 0x28e   : > { %1351 = vadd.xlane.f32.xlu1 %v1244_v56  ;;  %v972_v18 = vpop.xlane.xlu1 %971  ;;  %1285 = vadd.xlane.f32.xlu0 %v1211_v7  ;;  %v1117_v14 = vsub.f32 %v3302_v15, %v1053_v30  ;;  %v1213_v15 = vmul.f32 %v3637_v35, %v3637_v35 }
 0x28f   : > { %v1054_v46 = vmul.f32 0.020408163, %v972_v18  ;;  %v910_v54 = vpop.xlane.xlu0 %909  ;;  %v3627_v5 = vsel %vm880_vm0, %v1086_v0, 0.0 }
 0x290   : > { %v1214_v62 = vmul.f32 %v3627_v5, %v3627_v5  ;;  %v1023_v31 = vmul.f32 0.020408163, %v910_v54  ;;  %v3651_v18 = vsel %vm880_vm0, %v1117_v14, 0.0 }
 0x291   : > { %v1118_v6 = vsub.f32 %v3305_v16, %v1054_v46 }
 0x292   : > { %1291 = vadd.xlane.f32.xlu1 %v1214_v62  ;;  %v912_v24 = vpop.xlane.xlu1 %911  ;;  %1349 = vadd.xlane.f32.xlu0 %v1243_v13  ;;  %v1087_v16 = vsub.f32 %v3310_v21, %v1023_v31  ;;  %v1245_v21 = vmul.f32 %v3651_v18, %v3651_v18 }
 0x293   : > { %v1024_v48 = vmul.f32 0.020408163, %v912_v24  ;;  %v974_v56 = vpop.xlane.xlu0 %973  ;;  %v3641_v7 = vsel %vm880_vm0, %v1118_v6, 0.0 }
 0x294   : > { %v1246_v0 = vmul.f32 %v3641_v7, %v3641_v7  ;;  %v1055_v30 = vmul.f32 0.020408163, %v974_v56  ;;  %v3665_v24 = vsel %vm880_vm0, %v1087_v16, 0.0 }
 0x295   : > { %v1088_v8 = vsub.f32 %v3313_v22, %v1024_v48 }
 0x296   : > { %1355 = vadd.xlane.f32.xlu1 %v1246_v0  ;;  %v976_v46 = vpop.xlane.xlu1 %975  ;;  %1289 = vadd.xlane.f32.xlu0 %v1213_v15  ;;  %v1119_v22 = vsub.f32 %v3318_v23, %v1055_v30  ;;  %v1215_v23 = vmul.f32 %v3665_v24, %v3665_v24 }
 0x297   : > { %v1056_v54 = vmul.f32 0.020408163, %v976_v46  ;;  %v914_v62 = vpop.xlane.xlu0 %913  ;;  %v3655_v13 = vsel %vm880_vm0, %v1088_v8, 0.0 }
 0x298   : > { %v1216_v6 = vmul.f32 %v3655_v13, %v3655_v13  ;;  %v1025_v31 = vmul.f32 0.020408163, %v914_v62 }
 0x299   : > { %v1120_v14 = vsub.f32 %v3321_v33, %v1056_v54  ;;  %v3677_v33 = vsel %vm880_vm0, %v1119_v22, 0.0 }
 0x29a   : > { %1295 = vadd.xlane.f32.xlu1 %v1216_v6  ;;  %v916_v48 = vpop.xlane.xlu1 %915  ;;  %1353 = vadd.xlane.f32.xlu0 %v1245_v21  ;;  %v1089_v16 = vsub.f32 %v3326_v34, %v1025_v31  ;;  %v1247_v22 = vmul.f32 %v3677_v33, %v3677_v33 }
 0x29b   : > { %v3669_v56 = vsel %vm880_vm0, %v1120_v14, 0.0  ;;  %v1026_v0 = vmul.f32 0.020408163, %v916_v48  ;;  %v978_v15 = vpop.xlane.xlu0 %977 }
 0x29c   : > { %v1248_v8 = vmul.f32 %v3669_v56, %v3669_v56  ;;  %v1057_v46 = vmul.f32 0.020408163, %v978_v15  ;;  %v3691_v34 = vsel %vm880_vm0, %v1089_v16, 0.0 }
 0x29d   : > { %v1090_v30 = vsub.f32 %v3329_v43, %v1026_v0  ;;  %v1217_v16 = vmul.f32 %v3691_v34, %v3691_v34 }
 0x29e   : > { %1359 = vadd.xlane.f32.xlu1 %v1248_v8  ;;  %v980_v54 = vpop.xlane.xlu1 %979  ;;  %1293 = vadd.xlane.f32.xlu0 %v1215_v23  ;;  %v1121_v43 = vsub.f32 %v3334_v44, %v1057_v46  ;;  %v4314_v46 = vld [vmem:[#allocation16_spill] sm:$0xff] }
 0x29f   : > { %v3683_v62 = vsel %vm880_vm0, %v1090_v30, 0.0  ;;  %v1058_v6 = vmul.f32 0.020408163, %v980_v54  ;;  %v918_v21 = vpop.xlane.xlu0 %917 }
 0x2a0   : > { %v1218_v14 = vmul.f32 %v3683_v62, %v3683_v62  ;;  %v1027_v48 = vmul.f32 0.020408163, %v918_v21  ;;  %v3705_v44 = vsel %vm880_vm0, %v1121_v43, 0.0 }
 0x2a1   : > { %v1122_v31 = vsub.f32 %v3337_v57, %v1058_v6  ;;  %4313 = vst [vmem:[#allocation32_spill] sm:$0xff] %v3705_v44  ;;  %v1249_v43 = vmul.f32 %v3705_v44, %v3705_v44 }
 0x2a2   : > { %1299 = vadd.xlane.f32.xlu1 %v1218_v14  ;;  %v920_v0 = vpop.xlane.xlu1 %919  ;;  %1357 = vadd.xlane.f32.xlu0 %v1247_v22  ;;  %v1091_v57 = vsub.f32 %v3342_v58, %v1027_v48  ;;  %v4317_v48 = vld [vmem:[#allocation17_spill] sm:$0xff] }
 0x2a3   : > { %v3697_v15 = vsel %vm880_vm0, %v1122_v31, 0.0  ;;  %v1028_v8 = vmul.f32 0.020408163, %v920_v0  ;;  %v982_v23 = vpop.xlane.xlu0 %981 }
 0x2a4   : > { %v1250_v30 = vmul.f32 %v3697_v15, %v3697_v15  ;;  %v1059_v6 = vmul.f32 0.020408163, %v982_v23  ;;  %v3719_v58 = vsel %vm880_vm0, %v1091_v57, 0.0  ;;  %v4318_v23 = vld [vmem:[#allocation18_spill] sm:$0xff] }
 0x2a5   : > { %v1092_v54 = vsub.f32 %v4314_v46, %v1028_v8  ;;  %4316 = vst [vmem:[#allocation33_spill] sm:$0xff] %v3719_v58  ;;  %v1219_v57 = vmul.f32 %v3719_v58, %v3719_v58 }
 0x2a6   : > { %1363 = vadd.xlane.f32.xlu1 %v1250_v30  ;;  %v984_v21 = vpop.xlane.xlu1 %983  ;;  %1297 = vadd.xlane.f32.xlu0 %v1217_v16  ;;  %v1123_v8 = vsub.f32 %v4317_v48, %v1059_v6 }
 0x2a7   : > { %v3711_v14 = vsel %vm880_vm0, %v1092_v54, 0.0  ;;  %v1060_v22 = vmul.f32 0.020408163, %v984_v21  ;;  %v922_v31 = vpop.xlane.xlu0 %921 }
 0x2a8   : > { %4315 = vst [vmem:[#allocation16_spill] sm:$0xff] %v3711_v14  ;;  %v1220_v0 = vmul.f32 %v3711_v14, %v3711_v14  ;;  %v1029_v16 = vmul.f32 0.020408163, %v922_v31  ;;  %v3733_v6 = vsel %vm880_vm0, %v1123_v8, 0.0 }
 0x2a9   : > { %v1124_v30 = vsub.f32 %v4318_v23, %v1060_v22  ;;  %v4320_v22 = vld [vmem:[#allocation19_spill] sm:$0xff]  ;;  %v1251_v8 = vmul.f32 %v3733_v6, %v3733_v6 }
 0x2aa   : > { %1303 = vadd.xlane.f32.xlu1 %v1220_v0  ;;  %v924_v46 = vpop.xlane.xlu1 %923  ;;  %1361 = vadd.xlane.f32.xlu0 %v1249_v43  ;;  %v1093_v31 = vsub.f32 %v4320_v22, %v1029_v16  ;;  %v4321_v0 = vld [vmem:[#allocation20_spill] sm:$0xff] }
 0x2ab   : > { %v3725_v54 = vsel %vm880_vm0, %v1124_v30, 0.0  ;;  %v1030_v21 = vmul.f32 0.020408163, %v924_v46  ;;  %v986_v14 = vpop.xlane.xlu0 %985 }
 0x2ac   : > { %4319 = vst [vmem:[#allocation17_spill] sm:$0xff] %v3725_v54  ;;  %v1252_v44 = vmul.f32 %v3725_v54, %v3725_v54  ;;  %v1061_v48 = vmul.f32 0.020408163, %v986_v14  ;;  %v3747_v16 = vsel %vm880_vm0, %v1093_v31, 0.0 }
 0x2ad   : > { %v1094_v43 = vsub.f32 %v4321_v0, %v1030_v21  ;;  %v1221_v31 = vmul.f32 %v3747_v16, %v3747_v16 }
 0x2ae   : > { %1367 = vadd.xlane.f32.xlu1 %v1252_v44  ;;  %v988_v23 = vpop.xlane.xlu1 %987  ;;  %1301 = vadd.xlane.f32.xlu0 %v1219_v57  ;;  %v1125_v44 = vsub.f32 %v3366_v29, %v1061_v48 }
 0x2af   : > { %v3739_v30 = vsel %vm880_vm0, %v1094_v43, 0.0  ;;  %v1062_v46 = vmul.f32 0.020408163, %v988_v23  ;;  %v926_v54 = vpop.xlane.xlu0 %925 }
 0x2b0   : > { %v1222_v58 = vmul.f32 %v3739_v30, %v3739_v30  ;;  %v1031_v21 = vmul.f32 0.020408163, %v926_v54  ;;  %v3761_v29 = vsel %vm880_vm0, %v1125_v44, 0.0 }
 0x2b1   : > { %v1126_v14 = vsub.f32 %v3369_v51, %v1062_v46  ;;  %v1253_v44 = vmul.f32 %v3761_v29, %v3761_v29 }
 0x2b2   : > { %1307 = vadd.xlane.f32.xlu1 %v1222_v58  ;;  %v928_v57 = vpop.xlane.xlu1 %927  ;;  %1365 = vadd.xlane.f32.xlu0 %v1251_v8  ;;  %v1095_v51 = vsub.f32 %v3374_v49, %v1031_v21 }
 0x2b3   : > { %v3753_v22 = vsel %vm880_vm0, %v1126_v14, 0.0  ;;  %v1032_v0 = vmul.f32 0.020408163, %v928_v57  ;;  %v990_v43 = vpop.xlane.xlu0 %989 }
 0x2b4   : > { %v1254_v23 = vmul.f32 %v3753_v22, %v3753_v22  ;;  %v1063_v54 = vmul.f32 0.020408163, %v990_v43  ;;  %v3775_v49 = vsel %vm880_vm0, %v1095_v51, 0.0 }
 0x2b5   : > { %v1096_v58 = vsub.f32 %v3377_v52, %v1032_v0  ;;  %v1223_v51 = vmul.f32 %v3775_v49, %v3775_v49 }
 0x2b6   : > { %1371 = vadd.xlane.f32.xlu1 %v1254_v23  ;;  %v992_v48 = vpop.xlane.xlu1 %991  ;;  %1305 = vadd.xlane.f32.xlu0 %v1221_v31  ;;  %v1127_v52 = vsub.f32 %v3382_v50, %v1063_v54 }
 0x2b7   : > { %v3767_v46 = vsel %vm880_vm0, %v1096_v58, 0.0  ;;  %v1064_v8 = vmul.f32 0.020408163, %v992_v48  ;;  %v930_v14 = vpop.xlane.xlu0 %929 }
 0x2b8   : > { %v1224_v57 = vmul.f32 %v3767_v46, %v3767_v46  ;;  %v1033_v0 = vmul.f32 0.020408163, %v930_v14  ;;  %v3789_v50 = vsel %vm880_vm0, %v1127_v52, 0.0 }
 0x2b9   : > { %v1128_v21 = vsub.f32 %v3385_v28, %v1064_v8  ;;  %v1255_v52 = vmul.f32 %v3789_v50, %v3789_v50 }
 0x2ba   : > { %1311 = vadd.xlane.f32.xlu1 %v1224_v57  ;;  %v932_v43 = vpop.xlane.xlu1 %931  ;;  %1369 = vadd.xlane.f32.xlu0 %v1253_v44  ;;  %v1097_v28 = vsub.f32 %v3390_v1, %v1033_v0 }
 0x2bb   : > { %v3781_v23 = vsel %vm880_vm0, %v1128_v21, 0.0  ;;  %v1034_v31 = vmul.f32 0.020408163, %v932_v43  ;;  %v994_v58 = vpop.xlane.xlu0 %993 }
 0x2bc   : > { %v1256_v48 = vmul.f32 %v3781_v23, %v3781_v23  ;;  %v1065_v8 = vmul.f32 0.020408163, %v994_v58  ;;  %v3803_v1 = vsel %vm880_vm0, %v1097_v28, 0.0 }
 0x2bd   : > { %v1098_v54 = vsub.f32 %v3393_v59, %v1034_v31  ;;  %v1225_v28 = vmul.f32 %v3803_v1, %v3803_v1 }
 0x2be   : > { %1375 = vadd.xlane.f32.xlu1 %v1256_v48  ;;  %v996_v14 = vpop.xlane.xlu1 %995  ;;  %1309 = vadd.xlane.f32.xlu0 %v1223_v51  ;;  %v1129_v59 = vsub.f32 %v3398_v2, %v1065_v8 }
 0x2bf   : > { %v3795_v57 = vsel %vm880_vm0, %v1098_v54, 0.0  ;;  %v1066_v44 = vmul.f32 0.020408163, %v996_v14  ;;  %v934_v21 = vpop.xlane.xlu0 %933 }
 0x2c0   : > { %v1226_v43 = vmul.f32 %v3795_v57, %v3795_v57  ;;  %v1035_v31 = vmul.f32 0.020408163, %v934_v21  ;;  %v3817_v2 = vsel %vm880_vm0, %v1129_v59, 0.0 }
 0x2c1   : > { %v1130_v0 = vsub.f32 %v3401_v60, %v1066_v44  ;;  %v1257_v59 = vmul.f32 %v3817_v2, %v3817_v2 }
 0x2c2   : > { %1315 = vadd.xlane.f32.xlu1 %v1226_v43  ;;  %v936_v58 = vpop.xlane.xlu1 %935  ;;  %1373 = vadd.xlane.f32.xlu0 %v1255_v52  ;;  %v1099_v60 = vsub.f32 %v3406_v11, %v1035_v31 }
 0x2c3   : > { %v3809_v48 = vsel %vm880_vm0, %v1130_v0, 0.0  ;;  %v1036_v51 = vmul.f32 0.020408163, %v936_v58  ;;  %v998_v54 = vpop.xlane.xlu0 %997 }
 0x2c4   : > { %v1258_v14 = vmul.f32 %v3809_v48, %v3809_v48  ;;  %v1067_v44 = vmul.f32 0.020408163, %v998_v54  ;;  %v3831_v11 = vsel %vm880_vm0, %v1099_v60, 0.0 }
 0x2c5   : > { %v1100_v8 = vsub.f32 %v3409_v9, %v1036_v51  ;;  %4322 = vst [vmem:[#allocation18_spill] sm:$0xff] %v3831_v11  ;;  %v1227_v60 = vmul.f32 %v3831_v11, %v3831_v11 }
 0x2c6   : > { %1379 = vadd.xlane.f32.xlu1 %v1258_v14  ;;  %v1000_v21 = vpop.xlane.xlu1 %999  ;;  %1313 = vadd.xlane.f32.xlu0 %v1225_v28  ;;  %v1131_v9 = vsub.f32 %v3414_v12, %v1067_v44 }
 0x2c7   : > { %v3823_v43 = vsel %vm880_vm0, %v1100_v8, 0.0  ;;  %v1068_v52 = vmul.f32 0.020408163, %v1000_v21  ;;  %v938_v0 = vpop.xlane.xlu0 %937 }
 0x2c8   : > { %v1228_v58 = vmul.f32 %v3823_v43, %v3823_v43  ;;  %v1037_v51 = vmul.f32 0.020408163, %v938_v0  ;;  %v3845_v12 = vsel %vm880_vm0, %v1131_v9, 0.0 }
 0x2c9   : > { %v1132_v31 = vsub.f32 %v3417_v10, %v1068_v52  ;;  %4324 = vst [vmem:[#allocation20_spill] sm:$0xff] %v3845_v12  ;;  %v4325_v10 = vld [vmem:[#allocation21_spill] sm:$0xff]  ;;  %v4326_v52 = vld [vmem:[#allocation22_spill] sm:$0xff]  ;;  %v1259_v9 = vmul.f32 %v3845_v12, %v3845_v12 }
 0x2ca   : > { %1319 = vadd.xlane.f32.xlu1 %v1228_v58  ;;  %v940_v54 = vpop.xlane.xlu1 %939  ;;  %1377 = vadd.xlane.f32.xlu0 %v1257_v59  ;;  %v1101_v44 = vsub.f32 %v4325_v10, %v1037_v51 }
 0x2cb   : > { %v3837_v14 = vsel %vm880_vm0, %v1132_v31, 0.0  ;;  %v1038_v28 = vmul.f32 0.020408163, %v940_v54  ;;  %v1002_v8 = vpop.xlane.xlu0 %1001 }
 0x2cc   : > { %4323 = vst [vmem:[#allocation19_spill] sm:$0xff] %v3837_v14  ;;  %v1260_v21 = vmul.f32 %v3837_v14, %v3837_v14  ;;  %v1069_v58 = vmul.f32 0.020408163, %v1002_v8  ;;  %v3859_v51 = vsel %vm880_vm0, %v1101_v44, 0.0 }
 0x2cd   : > { %v1102_v0 = vsub.f32 %v4326_v52, %v1038_v28  ;;  %4328 = vst [vmem:[#allocation22_spill] sm:$0xff] %v3859_v51  ;;  %v4329_v28 = vld [vmem:[#allocation23_spill] sm:$0xff]  ;;  %v1229_v44 = vmul.f32 %v3859_v51, %v3859_v51 }
 0x2ce   : > { %1383 = vadd.xlane.f32.xlu1 %v1260_v21  ;;  %v1004_v59 = vpop.xlane.xlu1 %1003  ;;  %1317 = vadd.xlane.f32.xlu0 %v1227_v60  ;;  %v1133_v8 = vsub.f32 %v4329_v28, %v1069_v58  ;;  %v4330_v21 = vld [vmem:[#allocation24_spill] sm:$0xff] }
 0x2cf   : > { %v3851_v31 = vsel %vm880_vm0, %v1102_v0, 0.0  ;;  %v1070_v54 = vmul.f32 0.020408163, %v1004_v59  ;;  %v942_v14 = vpop.xlane.xlu0 %941 }
 0x2d0   : > { %4327 = vst [vmem:[#allocation21_spill] sm:$0xff] %v3851_v31  ;;  %v1230_v11 = vmul.f32 %v3851_v31, %v3851_v31  ;;  %v1039_v10 = vmul.f32 0.020408163, %v942_v14  ;;  %v3873_v58 = vsel %vm880_vm0, %v1133_v8, 0.0  ;;  %v4333_v14 = vld [vmem:[#allocation25_spill] sm:$0xff] }
 0x2d1   : > { %v1134_v60 = vsub.f32 %v4330_v21, %v1070_v54  ;;  %4332 = vst [vmem:[#allocation24_spill] sm:$0xff] %v3873_v58  ;;  %v4334_v54 = vld [vmem:[#allocation26_spill] sm:$0xff]  ;;  %v1261_v8 = vmul.f32 %v3873_v58, %v3873_v58 }
 0x2d2   : > { %1323 = vadd.xlane.f32.xlu1 %v1230_v11  ;;  %v944_v52 = vpop.xlane.xlu1 %943  ;;  %1381 = vadd.xlane.f32.xlu0 %v1259_v9  ;;  %v1103_v11 = vsub.f32 %v4333_v14, %v1039_v10 }
 0x2d3   : > { %v3865_v0 = vsel %vm880_vm0, %v1134_v60, 0.0  ;;  %v1040_v59 = vmul.f32 0.020408163, %v944_v52  ;;  %v1006_v31 = vpop.xlane.xlu0 %1005 }
 0x2d4   : > { %4331 = vst [vmem:[#allocation23_spill] sm:$0xff] %v3865_v0  ;;  %v1262_v12 = vmul.f32 %v3865_v0, %v3865_v0  ;;  %v1071_v28 = vmul.f32 0.020408163, %v1006_v31  ;;  %v3887_v10 = vsel %vm880_vm0, %v1103_v11, 0.0  ;;  %v4341_v0 = vld [vmem:[#allocation29_spill] sm:$0xff] }
 0x2d5   : > { %v1104_v9 = vsub.f32 %v4334_v54, %v1040_v59  ;;  %4336 = vst [vmem:[#allocation26_spill] sm:$0xff] %v3887_v10  ;;  %v4337_v59 = vld [vmem:[#allocation27_spill] sm:$0xff] }
 0x2d6   : > { %1387 = vadd.xlane.f32.xlu1 %v1262_v12  ;;  %v1008_v21 = vpop.xlane.xlu1 %1007  ;;  %1321 = vadd.xlane.f32.xlu0 %v1229_v44  ;;  %v1135_v31 = vsub.f32 %v4337_v59, %v1071_v28  ;;  %v4338_v12 = vld [vmem:[#allocation28_spill] sm:$0xff] }
 0x2d7   : > { %v3879_v60 = vsel %vm880_vm0, %v1104_v9, 0.0  ;;  %v1072_v52 = vmul.f32 0.020408163, %v1008_v21  ;;  %v1231_v9 = vmul.f32 %v3887_v10, %v3887_v10 }
 0x2d8   : > { %4335 = vst [vmem:[#allocation25_spill] sm:$0xff] %v3879_v60  ;;  %v1232_v51 = vmul.f32 %v3879_v60, %v3879_v60  ;;  %v3901_v11 = vsel %vm880_vm0, %v1135_v31, 0.0 }
 0x2d9   : > { %v1136_v14 = vsub.f32 %v4338_v12, %v1072_v52  ;;  %4340 = vst [vmem:[#allocation28_spill] sm:$0xff] %v3901_v11 }
 0x2da   : > { %1327 = vadd.xlane.f32.xlu1 %v1232_v51  ;;  %1385 = vadd.xlane.f32.xlu0 %v1261_v8  ;;  %v1263_v51 = vmul.f32 %v3901_v11, %v3901_v11 }
 0x2db   : > { %v3893_v44 = vsel %vm880_vm0, %v1136_v14, 0.0 }
 0x2dc   : > { %4339 = vst [vmem:[#allocation27_spill] sm:$0xff] %v3893_v44  ;;  %v1264_v54 = vmul.f32 %v3893_v44, %v3893_v44 }
 0x2de   : > { %1391 = vadd.xlane.f32.xlu1 %v1264_v54  ;;  %1325 = vadd.xlane.f32.xlu0 %v1231_v9 }
 0x2e2   : > { %1389 = vadd.xlane.f32.xlu0 %v1263_v51 }
 0x2eb   : > { %v1268_v28 = vpop.xlane.xlu1 %1267 }
 0x2ec   : > { %v1394_v21 = vmul.f32 0.020408163, %v1268_v28  ;;  %v1266_v52 = vpop.xlane.xlu0 %1265 }
 0x2ed   : > { %v1393_v8 = vmul.f32 0.020408163, %v1266_v52 }
 0x2ee   : > { %v1458_v59 = vadd.f32 1e-06, %v1394_v21  ;;  %v3908_v21 = vld [vmem:[%s4229_s3] ss:$0 sm:$0xff] }
 0x2ef   : > { %v1457_v12 = vadd.f32 1e-06, %v1393_v8  ;;  %v1332_v14 = vpop.xlane.xlu1 %1331 }
 0x2f0   : > { %2569 = vrsqrt.f32 %v1458_v59  ;;  %v1426_v44 = vmul.f32 0.020408163, %v1332_v14  ;;  %v1330_v10 = vpop.xlane.xlu0 %1329  ;;  %v3914_v59 = vld [vmem:[%s4230_s4] ss:$0 sm:$0xff] }
 0x2f1   : > { %2571 = vrsqrt.f32 %v1457_v12  ;;  %v1425_v26 = vmul.f32 0.020408163, %v1330_v10 }
 0x2f2   : > { %v1490_v31 = vadd.f32 1e-06, %v1426_v44 }
 0x2f3   : > { %v1489_v58 = vadd.f32 1e-06, %v1425_v26  ;;  %v1272_v54 = vpop.xlane.xlu1 %1271 }
 0x2f4   : > { %2573 = vrsqrt.f32 %v1490_v31  ;;  %v1396_v9 = vmul.f32 0.020408163, %v1272_v54 }
 0x2f5   : > { %2575 = vrsqrt.f32 %v1489_v58 }
 0x2f6   : > { %v1460_v11 = vadd.f32 1e-06, %v1396_v9 }
 0x2f7   : > { %v1336_v51 = vpop.xlane.xlu1 %1335 }
 0x2f8   : > { %2577 = vrsqrt.f32 %v1460_v11  ;;  %v1428_v28 = vmul.f32 0.020408163, %v1336_v51 }
 0x2fa   : > { %v2570_v60 = vpop.eup %2569  ;;  %v1492_v52 = vadd.f32 1e-06, %v1428_v28 }
 0x2fb   : > { %v2572_v8 = vpop.eup %2571  ;;  %v1586_v10 = vmul.f32 %v2570_v60, %v3461_v41  ;;  %v1270_v44 = vpop.xlane.xlu0 %1269 }
 0x2fc   : > { %v1585_v58 = vmul.f32 %v2572_v8, %v3467_v20  ;;  %2579 = vrsqrt.f32 %v1492_v52  ;;  %v1395_v11 = vmul.f32 0.020408163, %v1270_v44 }
 0x2fd   : > { %v1657_v12 = vmul.f32 %v3908_v21, %v1586_v10 }
 0x2fe   : > { %v2574_v14 = vpop.eup %2573  ;;  %v1656_v26 = vmul.f32 %v3908_v21, %v1585_v58  ;;  %v1459_v31 = vadd.f32 1e-06, %v1395_v11  ;;  %v4342_v11 = vld [vmem:[#allocation30_spill] sm:$0xff] }
 0x2ff   : > { %v2576_v54 = vpop.eup %2575  ;;  %v1728_v41 = vadd.f32 %v3914_v59, %v1657_v12  ;;  %v1618_v60 = vmul.f32 %v2574_v14, %v3475_v36  ;;  %v1276_v9 = vpop.xlane.xlu1 %1275 }
 0x300   : > { %v1334_v51 = vpop.xlane.xlu0 %1333  ;;  %v1727_v28 = vadd.f32 %v3914_v59, %v1656_v26  ;;  %v1617_v20 = vmul.f32 %v2576_v54, %v4341_v0  ;;  %2581 = vrsqrt.f32 %v1459_v31  ;;  %v1398_v52 = vmul.f32 0.020408163, %v1276_v9 }
 0x301   : > { %1792 = vst [vmem:[%s3925_s8 + $0x8] sm:$0xff] %v1728_v41  ;;  %v1689_v8 = vmul.f32 %v3908_v21, %v1618_v60  ;;  %v1427_v10 = vmul.f32 0.020408163, %v1334_v51 }
 0x302   : > { %v2578_v44 = vpop.eup %2577  ;;  %1791 = vst [vmem:[%s3925_s8] sm:$0xff] %v1727_v28  ;;  %v1688_v36 = vmul.f32 %v3908_v21, %v1617_v20  ;;  %v1462_v58 = vadd.f32 1e-06, %v1398_v52 }
 0x303   : > { %v1760_v0 = vadd.f32 %v3914_v59, %v1689_v8  ;;  %v1588_v12 = vmul.f32 %v2578_v44, %v4342_v11  ;;  %v1491_v14 = vadd.f32 1e-06, %v1427_v10  ;;  %v1340_v26 = vpop.xlane.xlu1 %1339  ;;  %v4343_v8 = vld [vmem:[#allocation31_spill] sm:$0xff] }
 0x304   : > { %v1274_v31 = vpop.xlane.xlu0 %1273  ;;  %v1759_v54 = vadd.f32 %v3914_v59, %v1688_v36  ;;  %2583 = vrsqrt.f32 %v1462_v58  ;;  %v1430_v41 = vmul.f32 0.020408163, %v1340_v26 }
 0x305   : > { %v1397_v60 = vmul.f32 0.020408163, %v1274_v31  ;;  %1824 = vst [vmem:[%s3925_s8 + $0x108] sm:$0xff] %v1760_v0  ;;  %v1659_v9 = vmul.f32 %v3908_v21, %v1588_v12  ;;  %2585 = vrsqrt.f32 %v1491_v14 }
 0x306   : > { %v2580_v51 = vpop.eup %2579  ;;  %1823 = vst [vmem:[%s3925_s8 + $0x100] sm:$0xff] %v1759_v54  ;;  %v1494_v28 = vadd.f32 1e-06, %v1430_v41 }
 0x307   : > { %v1461_v20 = vadd.f32 1e-06, %v1397_v60  ;;  %v1730_v52 = vadd.f32 %v3914_v59, %v1659_v9  ;;  %v1620_v10 = vmul.f32 %v2580_v51, %v4343_v8  ;;  %v1280_v44 = vpop.xlane.xlu1 %1279 }
 0x308   : > { %v1338_v11 = vpop.xlane.xlu0 %1337  ;;  %2587 = vrsqrt.f32 %v1494_v28  ;;  %v1400_v36 = vmul.f32 0.020408163, %v1280_v44 }
 0x309   : > { %v1429_v58 = vmul.f32 0.020408163, %v1338_v11  ;;  %1794 = vst [vmem:[%s3925_s8 + $0x18] sm:$0xff] %v1730_v52  ;;  %v1691_v0 = vmul.f32 %v3908_v21, %v1620_v10  ;;  %2589 = vrsqrt.f32 %v1461_v20 }
 0x30a   : > { %v2582_v12 = vpop.eup %2581  ;;  %v1464_v14 = vadd.f32 1e-06, %v1400_v36 }
 0x30b   : > { %v1493_v26 = vadd.f32 1e-06, %v1429_v58  ;;  %v1762_v31 = vadd.f32 %v3914_v59, %v1691_v0  ;;  %v1587_v54 = vmul.f32 %v2582_v12, %v3503_v4  ;;  %v1344_v41 = vpop.xlane.xlu1 %1343 }
 0x30c   : > { %v1278_v60 = vpop.xlane.xlu0 %1277  ;;  %2591 = vrsqrt.f32 %v1464_v14  ;;  %v1432_v9 = vmul.f32 0.020408163, %v1344_v41 }
 0x30d   : > { %v1399_v51 = vmul.f32 0.020408163, %v1278_v60  ;;  %1826 = vst [vmem:[%s3925_s8 + $0x118] sm:$0xff] %v1762_v31  ;;  %v1658_v28 = vmul.f32 %v3908_v21, %v1587_v54  ;;  %2593 = vrsqrt.f32 %v1493_v26 }
 0x30e   : > { %v2584_v52 = vpop.eup %2583  ;;  %v1496_v8 = vadd.f32 1e-06, %v1432_v9 }
 0x30f   : > { %v1463_v20 = vadd.f32 1e-06, %v1399_v51  ;;  %v2586_v10 = vpop.eup %2585  ;;  %v1729_v44 = vadd.f32 %v3914_v59, %v1658_v28  ;;  %v1590_v11 = vmul.f32 %v2584_v52, %v3515_v19  ;;  %v1284_v36 = vpop.xlane.xlu1 %1283 }
 0x310   : > { %v1342_v4 = vpop.xlane.xlu0 %1341  ;;  %v1619_v58 = vmul.f32 %v2586_v10, %v3511_v38  ;;  %2595 = vrsqrt.f32 %v1496_v8  ;;  %v1402_v0 = vmul.f32 0.020408163, %v1284_v36 }
 0x311   : > { %v1431_v12 = vmul.f32 0.020408163, %v1342_v4  ;;  %1793 = vst [vmem:[%s3925_s8 + $0x10] sm:$0xff] %v1729_v44  ;;  %v1661_v14 = vmul.f32 %v3908_v21, %v1590_v11  ;;  %2597 = vrsqrt.f32 %v1463_v20 }
 0x312   : > { %v2588_v26 = vpop.eup %2587  ;;  %v1690_v31 = vmul.f32 %v3908_v21, %v1619_v58  ;;  %v1466_v54 = vadd.f32 1e-06, %v1402_v0 }
 0x313   : > { %v1495_v41 = vadd.f32 1e-06, %v1431_v12  ;;  %v2590_v60 = vpop.eup %2589  ;;  %v1732_v19 = vadd.f32 %v3914_v59, %v1661_v14  ;;  %v1622_v9 = vmul.f32 %v2588_v26, %v3529_v17  ;;  %v1348_v38 = vpop.xlane.xlu1 %1347 }
 0x314   : > { %v1282_v51 = vpop.xlane.xlu0 %1281  ;;  %v1761_v28 = vadd.f32 %v3914_v59, %v1690_v31  ;;  %v1589_v52 = vmul.f32 %v2590_v60, %v3525_v32  ;;  %2599 = vrsqrt.f32 %v1466_v54  ;;  %v1434_v8 = vmul.f32 0.020408163, %v1348_v38 }
 0x315   : > { %1796 = vst [vmem:[%s3925_s8 + $0x28] sm:$0xff] %v1732_v19  ;;  %v1693_v20 = vmul.f32 %v3908_v21, %v1622_v9  ;;  %2601 = vrsqrt.f32 %v1495_v41  ;;  %v1401_v10 = vmul.f32 0.020408163, %v1282_v51 }
 0x316   : > { %v2592_v44 = vpop.eup %2591  ;;  %1825 = vst [vmem:[%s3925_s8 + $0x110] sm:$0xff] %v1761_v28  ;;  %v1660_v11 = vmul.f32 %v3908_v21, %v1589_v52  ;;  %v1498_v36 = vadd.f32 1e-06, %v1434_v8 }
 0x317   : > { %v2594_v17 = vpop.eup %2593  ;;  %v1764_v4 = vadd.f32 %v3914_v59, %v1693_v20  ;;  %v1592_v58 = vmul.f32 %v2592_v44, %v3543_v45  ;;  %v1465_v32 = vadd.f32 1e-06, %v1401_v10  ;;  %v1288_v0 = vpop.xlane.xlu1 %1287 }
 0x318   : > { %v1346_v12 = vpop.xlane.xlu0 %1345  ;;  %v1731_v14 = vadd.f32 %v3914_v59, %v1660_v11  ;;  %v1621_v26 = vmul.f32 %v2594_v17, %v3539_v42  ;;  %2603 = vrsqrt.f32 %v1498_v36  ;;  %v1404_v31 = vmul.f32 0.020408163, %v1288_v0 }
 0x319   : > { %1828 = vst [vmem:[%s3925_s8 + $0x128] sm:$0xff] %v1764_v4  ;;  %v1663_v54 = vmul.f32 %v3908_v21, %v1592_v58  ;;  %2605 = vrsqrt.f32 %v1465_v32  ;;  %v1433_v41 = vmul.f32 0.020408163, %v1346_v12 }
 0x31a   : > { %v2596_v60 = vpop.eup %2595  ;;  %1795 = vst [vmem:[%s3925_s8 + $0x20] sm:$0xff] %v1731_v14  ;;  %v1692_v19 = vmul.f32 %v3908_v21, %v1621_v26  ;;  %v1468_v45 = vadd.f32 1e-06, %v1404_v31 }
 0x31b   : > { %v2598_v9 = vpop.eup %2597  ;;  %v1734_v38 = vadd.f32 %v3914_v59, %v1663_v54  ;;  %v1624_v51 = vmul.f32 %v2596_v60, %v3557_v47  ;;  %v1497_v42 = vadd.f32 1e-06, %v1433_v41  ;;  %v1352_v28 = vpop.xlane.xlu1 %1351 }
 0x31c   : > { %v1286_v52 = vpop.xlane.xlu0 %1285  ;;  %v1763_v8 = vadd.f32 %v3914_v59, %v1692_v19  ;;  %v1591_v20 = vmul.f32 %v2598_v9, %v3553_v37  ;;  %2607 = vrsqrt.f32 %v1468_v45  ;;  %v1436_v10 = vmul.f32 0.020408163, %v1352_v28 }
 0x31d   : > { %1798 = vst [vmem:[%s3925_s8 + $0x38] sm:$0xff] %v1734_v38  ;;  %v1695_v44 = vmul.f32 %v3908_v21, %v1624_v51  ;;  %2609 = vrsqrt.f32 %v1497_v42  ;;  %v1403_v11 = vmul.f32 0.020408163, %v1286_v52 }
 0x31e   : > { %v2600_v36 = vpop.eup %2599  ;;  %1827 = vst [vmem:[%s3925_s8 + $0x120] sm:$0xff] %v1763_v8  ;;  %v1662_v17 = vmul.f32 %v3908_v21, %v1591_v20  ;;  %v1500_v47 = vadd.f32 1e-06, %v1436_v10 }
 0x31f   : > { %v2602_v4 = vpop.eup %2601  ;;  %v1766_v58 = vadd.f32 %v3914_v59, %v1695_v44  ;;  %v1594_v32 = vmul.f32 %v2600_v36, %v3571_v53  ;;  %v1467_v37 = vadd.f32 1e-06, %v1403_v11  ;;  %v1292_v0 = vpop.xlane.xlu1 %1291 }
 0x320   : > { %v1350_v12 = vpop.xlane.xlu0 %1349  ;;  %v1733_v14 = vadd.f32 %v3914_v59, %v1662_v17  ;;  %v1623_v26 = vmul.f32 %v2602_v4, %v3567_v27  ;;  %2611 = vrsqrt.f32 %v1500_v47  ;;  %v1406_v31 = vmul.f32 0.020408163, %v1292_v0 }
 0x321   : > { %1830 = vst [vmem:[%s3925_s8 + $0x138] sm:$0xff] %v1766_v58  ;;  %v1665_v54 = vmul.f32 %v3908_v21, %v1594_v32  ;;  %2613 = vrsqrt.f32 %v1467_v37  ;;  %v1435_v41 = vmul.f32 0.020408163, %v1350_v12 }
 0x322   : > { %v2604_v60 = vpop.eup %2603  ;;  %1797 = vst [vmem:[%s3925_s8 + $0x30] sm:$0xff] %v1733_v14  ;;  %v1694_v19 = vmul.f32 %v3908_v21, %v1623_v26  ;;  %v1470_v53 = vadd.f32 1e-06, %v1406_v31 }
 0x323   : > { %v2606_v45 = vpop.eup %2605  ;;  %v1736_v9 = vadd.f32 %v3914_v59, %v1665_v54  ;;  %v1626_v38 = vmul.f32 %v2604_v60, %v3585_v55  ;;  %v1499_v27 = vadd.f32 1e-06, %v1435_v41  ;;  %v1356_v51 = vpop.xlane.xlu1 %1355 }
 0x324   : > { %v1290_v42 = vpop.xlane.xlu0 %1289  ;;  %v1765_v28 = vadd.f32 %v3914_v59, %v1694_v19  ;;  %v1593_v52 = vmul.f32 %v2606_v45, %v3581_v40  ;;  %2615 = vrsqrt.f32 %v1470_v53  ;;  %v1438_v8 = vmul.f32 0.020408163, %v1356_v51 }
 0x325   : > { %1800 = vst [vmem:[%s3925_s8 + $0x48] sm:$0xff] %v1736_v9  ;;  %v1697_v20 = vmul.f32 %v3908_v21, %v1626_v38  ;;  %2617 = vrsqrt.f32 %v1499_v27  ;;  %v1405_v10 = vmul.f32 0.020408163, %v1290_v42 }
 0x326   : > { %v2608_v44 = vpop.eup %2607  ;;  %1829 = vst [vmem:[%s3925_s8 + $0x130] sm:$0xff] %v1765_v28  ;;  %v1664_v11 = vmul.f32 %v3908_v21, %v1593_v52  ;;  %v1502_v55 = vadd.f32 1e-06, %v1438_v8 }
 0x327   : > { %v2610_v36 = vpop.eup %2609  ;;  %v1768_v17 = vadd.f32 %v3914_v59, %v1697_v20  ;;  %v1596_v47 = vmul.f32 %v2608_v44, %v3599_v61  ;;  %v1469_v40 = vadd.f32 1e-06, %v1405_v10  ;;  %v1296_v4 = vpop.xlane.xlu1 %1295 }
 0x328   : > { %v1354_v58 = vpop.xlane.xlu0 %1353  ;;  %v1735_v32 = vadd.f32 %v3914_v59, %v1664_v11  ;;  %v1625_v37 = vmul.f32 %v2610_v36, %v3595_v25  ;;  %2619 = vrsqrt.f32 %v1502_v55  ;;  %v1408_v0 = vmul.f32 0.020408163, %v1296_v4 }
 0x329   : > { %1832 = vst [vmem:[%s3925_s8 + $0x148] sm:$0xff] %v1768_v17  ;;  %v1667_v12 = vmul.f32 %v3908_v21, %v1596_v47  ;;  %2621 = vrsqrt.f32 %v1469_v40  ;;  %v1437_v14 = vmul.f32 0.020408163, %v1354_v58 }
 0x32a   : > { %v2612_v26 = vpop.eup %2611  ;;  %1799 = vst [vmem:[%s3925_s8 + $0x40] sm:$0xff] %v1735_v32  ;;  %v1696_v31 = vmul.f32 %v3908_v21, %v1625_v37  ;;  %v1472_v61 = vadd.f32 1e-06, %v1408_v0 }
 0x32b   : > { %v2614_v54 = vpop.eup %2613  ;;  %v1738_v41 = vadd.f32 %v3914_v59, %v1667_v12  ;;  %v1628_v60 = vmul.f32 %v2612_v26, %v3613_v63  ;;  %v1501_v25 = vadd.f32 1e-06, %v1437_v14  ;;  %v1360_v19 = vpop.xlane.xlu1 %1359 }
 0x32c   : > { %v1294_v53 = vpop.xlane.xlu0 %1293  ;;  %v1767_v45 = vadd.f32 %v3914_v59, %v1696_v31  ;;  %v1595_v9 = vmul.f32 %v2614_v54, %v3609_v39  ;;  %2623 = vrsqrt.f32 %v1472_v61  ;;  %v1440_v38 = vmul.f32 0.020408163, %v1360_v19 }
 0x32d   : > { %1802 = vst [vmem:[%s3925_s8 + $0x58] sm:$0xff] %v1738_v41  ;;  %v1699_v27 = vmul.f32 %v3908_v21, %v1628_v60  ;;  %2625 = vrsqrt.f32 %v1501_v25  ;;  %v1407_v51 = vmul.f32 0.020408163, %v1294_v53 }
 0x32e   : > { %v2616_v42 = vpop.eup %2615  ;;  %1831 = vst [vmem:[%s3925_s8 + $0x140] sm:$0xff] %v1767_v45  ;;  %v1666_v28 = vmul.f32 %v3908_v21, %v1595_v9  ;;  %v1504_v63 = vadd.f32 1e-06, %v1440_v38 }
 0x32f   : > { %v2618_v52 = vpop.eup %2617  ;;  %v1770_v8 = vadd.f32 %v3914_v59, %v1699_v27  ;;  %v1598_v20 = vmul.f32 %v2616_v42, %v3627_v5  ;;  %v1471_v39 = vadd.f32 1e-06, %v1407_v51  ;;  %v1300_v10 = vpop.xlane.xlu1 %1299 }
 0x330   : > { %v1358_v44 = vpop.xlane.xlu0 %1357  ;;  %v1737_v11 = vadd.f32 %v3914_v59, %v1666_v28  ;;  %v1627_v55 = vmul.f32 %v2618_v52, %v3623_v3  ;;  %2627 = vrsqrt.f32 %v1504_v63  ;;  %v1410_v36 = vmul.f32 0.020408163, %v1300_v10 }
 0x331   : > { %1834 = vst [vmem:[%s3925_s8 + $0x158] sm:$0xff] %v1770_v8  ;;  %v1669_v17 = vmul.f32 %v3908_v21, %v1598_v20  ;;  %2629 = vrsqrt.f32 %v1471_v39  ;;  %v1439_v47 = vmul.f32 0.020408163, %v1358_v44 }
 0x332   : > { %v2620_v40 = vpop.eup %2619  ;;  %1801 = vst [vmem:[%s3925_s8 + $0x50] sm:$0xff] %v1737_v11  ;;  %v1698_v4 = vmul.f32 %v3908_v21, %v1627_v55  ;;  %v1474_v5 = vadd.f32 1e-06, %v1410_v36 }
 0x333   : > { %v2622_v58 = vpop.eup %2621  ;;  %v1740_v32 = vadd.f32 %v3914_v59, %v1669_v17  ;;  %v1630_v37 = vmul.f32 %v2620_v40, %v3641_v7  ;;  %v1503_v3 = vadd.f32 1e-06, %v1439_v47  ;;  %v1364_v0 = vpop.xlane.xlu1 %1363 }
 0x334   : > { %v1298_v12 = vpop.xlane.xlu0 %1297  ;;  %v1769_v14 = vadd.f32 %v3914_v59, %v1698_v4  ;;  %v1597_v26 = vmul.f32 %v2622_v58, %v3637_v35  ;;  %2631 = vrsqrt.f32 %v1474_v5  ;;  %v1442_v31 = vmul.f32 0.020408163, %v1364_v0 }
 0x335   : > { %1804 = vst [vmem:[%s3925_s8 + $0x68] sm:$0xff] %v1740_v32  ;;  %v1701_v61 = vmul.f32 %v3908_v21, %v1630_v37  ;;  %2633 = vrsqrt.f32 %v1503_v3  ;;  %v1409_v54 = vmul.f32 0.020408163, %v1298_v12 }
 0x336   : > { %v2624_v41 = vpop.eup %2623  ;;  %1833 = vst [vmem:[%s3925_s8 + $0x150] sm:$0xff] %v1769_v14  ;;  %v1668_v60 = vmul.f32 %v3908_v21, %v1597_v26  ;;  %v1506_v7 = vadd.f32 1e-06, %v1442_v31 }
 0x337   : > { %v2626_v25 = vpop.eup %2625  ;;  %v1772_v19 = vadd.f32 %v3914_v59, %v1701_v61  ;;  %v1600_v53 = vmul.f32 %v2624_v41, %v3655_v13  ;;  %v1473_v35 = vadd.f32 1e-06, %v1409_v54  ;;  %v1304_v45 = vpop.xlane.xlu1 %1303 }
 0x338   : > { %v1362_v9 = vpop.xlane.xlu0 %1361  ;;  %v1739_v38 = vadd.f32 %v3914_v59, %v1668_v60  ;;  %v1629_v27 = vmul.f32 %v2626_v25, %v3651_v18  ;;  %2635 = vrsqrt.f32 %v1506_v7  ;;  %v1412_v51 = vmul.f32 0.020408163, %v1304_v45 }
 0x339   : > { %1836 = vst [vmem:[%s3925_s8 + $0x168] sm:$0xff] %v1772_v19  ;;  %v1671_v42 = vmul.f32 %v3908_v21, %v1600_v53  ;;  %2637 = vrsqrt.f32 %v1473_v35  ;;  %v1441_v28 = vmul.f32 0.020408163, %v1362_v9 }
 0x33a   : > { %v2628_v63 = vpop.eup %2627  ;;  %1803 = vst [vmem:[%s3925_s8 + $0x60] sm:$0xff] %v1739_v38  ;;  %v1700_v52 = vmul.f32 %v3908_v21, %v1629_v27  ;;  %v1476_v13 = vadd.f32 1e-06, %v1412_v51 }
 0x33b   : > { %v2630_v8 = vpop.eup %2629  ;;  %v1742_v20 = vadd.f32 %v3914_v59, %v1671_v42  ;;  %v1632_v39 = vmul.f32 %v2628_v63, %v3669_v56  ;;  %v1505_v18 = vadd.f32 1e-06, %v1441_v28  ;;  %v1368_v10 = vpop.xlane.xlu1 %1367  ;;  %v4344_v63 = vld [vmem:[#allocation16_spill] sm:$0xff] }
 0x33c   : > { %v1302_v44 = vpop.xlane.xlu0 %1301  ;;  %v1771_v11 = vadd.f32 %v3914_v59, %v1700_v52  ;;  %v1599_v55 = vmul.f32 %v2630_v8, %v3665_v24  ;;  %2639 = vrsqrt.f32 %v1476_v13  ;;  %v1444_v36 = vmul.f32 0.020408163, %v1368_v10 }
 0x33d   : > { %1806 = vst [vmem:[%s3925_s8 + $0x78] sm:$0xff] %v1742_v20  ;;  %v1703_v17 = vmul.f32 %v3908_v21, %v1632_v39  ;;  %2641 = vrsqrt.f32 %v1505_v18  ;;  %v1411_v47 = vmul.f32 0.020408163, %v1302_v44  ;;  %v4345_v39 = vld [vmem:[#allocation32_spill] sm:$0xff] }
 0x33e   : > { %v2632_v40 = vpop.eup %2631  ;;  %1835 = vst [vmem:[%s3925_s8 + $0x160] sm:$0xff] %v1771_v11  ;;  %v1670_v4 = vmul.f32 %v3908_v21, %v1599_v55  ;;  %v1508_v56 = vadd.f32 1e-06, %v1444_v36 }
 0x33f   : > { %v2634_v5 = vpop.eup %2633  ;;  %v1774_v58 = vadd.f32 %v3914_v59, %v1703_v17  ;;  %v1602_v32 = vmul.f32 %v2632_v40, %v3683_v62  ;;  %v1475_v24 = vadd.f32 1e-06, %v1411_v47  ;;  %v1308_v37 = vpop.xlane.xlu1 %1307 }
 0x340   : > { %v1366_v3 = vpop.xlane.xlu0 %1365  ;;  %v1741_v0 = vadd.f32 %v3914_v59, %v1670_v4  ;;  %v1631_v12 = vmul.f32 %v2634_v5, %v3677_v33  ;;  %2643 = vrsqrt.f32 %v1508_v56  ;;  %v1414_v14 = vmul.f32 0.020408163, %v1308_v37  ;;  %v4346_v4 = vld [vmem:[#allocation17_spill] sm:$0xff] }
 0x341   : > { %1838 = vst [vmem:[%s3925_s8 + $0x178] sm:$0xff] %v1774_v58  ;;  %v1673_v26 = vmul.f32 %v3908_v21, %v1602_v32  ;;  %2645 = vrsqrt.f32 %v1475_v24  ;;  %v1443_v31 = vmul.f32 0.020408163, %v1366_v3  ;;  %v4347_v37 = vld [vmem:[#allocation33_spill] sm:$0xff] }
 0x342   : > { %v2636_v61 = vpop.eup %2635  ;;  %1805 = vst [vmem:[%s3925_s8 + $0x70] sm:$0xff] %v1741_v0  ;;  %v1702_v54 = vmul.f32 %v3908_v21, %v1631_v12  ;;  %v1478_v62 = vadd.f32 1e-06, %v1414_v14 }
 0x343   : > { %v2638_v41 = vpop.eup %2637  ;;  %v1744_v60 = vadd.f32 %v3914_v59, %v1673_v26  ;;  %v1634_v7 = vmul.f32 %v2636_v61, %v3697_v15  ;;  %v1507_v33 = vadd.f32 1e-06, %v1443_v31  ;;  %v1372_v25 = vpop.xlane.xlu1 %1371 }
 0x344   : > { %v1306_v19 = vpop.xlane.xlu0 %1305  ;;  %v1773_v53 = vadd.f32 %v3914_v59, %v1702_v54  ;;  %v1601_v35 = vmul.f32 %v2638_v41, %v3691_v34  ;;  %2647 = vrsqrt.f32 %v1478_v62  ;;  %v1446_v45 = vmul.f32 0.020408163, %v1372_v25 }
 0x345   : > { %1808 = vst [vmem:[%s3925_s8 + $0x88] sm:$0xff] %v1744_v60  ;;  %v1705_v9 = vmul.f32 %v3908_v21, %v1634_v7  ;;  %2649 = vrsqrt.f32 %v1507_v33  ;;  %v1413_v38 = vmul.f32 0.020408163, %v1306_v19 }
 0x346   : > { %v2640_v27 = vpop.eup %2639  ;;  %1837 = vst [vmem:[%s3925_s8 + $0x170] sm:$0xff] %v1773_v53  ;;  %v1672_v51 = vmul.f32 %v3908_v21, %v1601_v35  ;;  %v1510_v15 = vadd.f32 1e-06, %v1446_v45 }
 0x347   : > { %v2642_v42 = vpop.eup %2641  ;;  %v1776_v28 = vadd.f32 %v3914_v59, %v1705_v9  ;;  %v1604_v52 = vmul.f32 %v2640_v27, %v4344_v63  ;;  %v1477_v34 = vadd.f32 1e-06, %v1413_v38  ;;  %v1312_v13 = vpop.xlane.xlu1 %1311 }
 0x348   : > { %v1370_v8 = vpop.xlane.xlu0 %1369  ;;  %v1743_v20 = vadd.f32 %v3914_v59, %v1672_v51  ;;  %v1633_v18 = vmul.f32 %v2642_v42, %v4345_v39  ;;  %2651 = vrsqrt.f32 %v1510_v15  ;;  %v1416_v10 = vmul.f32 0.020408163, %v1312_v13 }
 0x349   : > { %1840 = vst [vmem:[%s3925_s8 + $0x188] sm:$0xff] %v1776_v28  ;;  %v1675_v44 = vmul.f32 %v3908_v21, %v1604_v52  ;;  %2653 = vrsqrt.f32 %v1477_v34  ;;  %v1445_v11 = vmul.f32 0.020408163, %v1370_v8 }
 0x34a   : > { %v2644_v55 = vpop.eup %2643  ;;  %1807 = vst [vmem:[%s3925_s8 + $0x80] sm:$0xff] %v1743_v20  ;;  %v1704_v36 = vmul.f32 %v3908_v21, %v1633_v18  ;;  %v1480_v17 = vadd.f32 1e-06, %v1416_v10 }
 0x34b   : > { %v2646_v47 = vpop.eup %2645  ;;  %v1746_v40 = vadd.f32 %v3914_v59, %v1675_v44  ;;  %v1636_v56 = vmul.f32 %v2644_v55, %v4346_v4  ;;  %v1509_v5 = vadd.f32 1e-06, %v1445_v11  ;;  %v1376_v58 = vpop.xlane.xlu1 %1375 }
 0x34c   : > { %v1310_v32 = vpop.xlane.xlu0 %1309  ;;  %v1775_v24 = vadd.f32 %v3914_v59, %v1704_v36  ;;  %v1603_v3 = vmul.f32 %v2646_v47, %v4347_v37  ;;  %2655 = vrsqrt.f32 %v1480_v17  ;;  %v1448_v0 = vmul.f32 0.020408163, %v1376_v58 }
 0x34d   : > { %1810 = vst [vmem:[%s3925_s8 + $0x98] sm:$0xff] %v1746_v40  ;;  %v1707_v12 = vmul.f32 %v3908_v21, %v1636_v56  ;;  %2657 = vrsqrt.f32 %v1509_v5  ;;  %v1415_v14 = vmul.f32 0.020408163, %v1310_v32 }
 0x34e   : > { %v2648_v26 = vpop.eup %2647  ;;  %1839 = vst [vmem:[%s3925_s8 + $0x180] sm:$0xff] %v1775_v24  ;;  %v1674_v31 = vmul.f32 %v3908_v21, %v1603_v3  ;;  %v1512_v61 = vadd.f32 1e-06, %v1448_v0 }
 0x34f   : > { %v2650_v54 = vpop.eup %2649  ;;  %v1778_v62 = vadd.f32 %v3914_v59, %v1707_v12  ;;  %v1606_v41 = vmul.f32 %v2648_v26, %v3739_v30  ;;  %v1479_v60 = vadd.f32 1e-06, %v1415_v14  ;;  %v1316_v7 = vpop.xlane.xlu1 %1315 }
 0x350   : > { %v1374_v33 = vpop.xlane.xlu0 %1373  ;;  %v1745_v25 = vadd.f32 %v3914_v59, %v1674_v31  ;;  %v1635_v19 = vmul.f32 %v2650_v54, %v3733_v6  ;;  %2659 = vrsqrt.f32 %v1512_v61  ;;  %v1418_v53 = vmul.f32 0.020408163, %v1316_v7 }
 0x351   : > { %1842 = vst [vmem:[%s3925_s8 + $0x198] sm:$0xff] %v1778_v62  ;;  %v1677_v35 = vmul.f32 %v3908_v21, %v1606_v41  ;;  %2661 = vrsqrt.f32 %v1479_v60  ;;  %v1447_v45 = vmul.f32 0.020408163, %v1374_v33 }
 0x352   : > { %v2652_v9 = vpop.eup %2651  ;;  %1809 = vst [vmem:[%s3925_s8 + $0x90] sm:$0xff] %v1745_v25  ;;  %v1706_v38 = vmul.f32 %v3908_v21, %v1635_v19  ;;  %v1482_v30 = vadd.f32 1e-06, %v1418_v53 }
 0x353   : > { %v2654_v27 = vpop.eup %2653  ;;  %v1748_v51 = vadd.f32 %v3914_v59, %v1677_v35  ;;  %v1638_v15 = vmul.f32 %v2652_v9, %v3753_v22  ;;  %v1511_v6 = vadd.f32 1e-06, %v1447_v45  ;;  %v1380_v42 = vpop.xlane.xlu1 %1379 }
 0x354   : > { %v1314_v28 = vpop.xlane.xlu0 %1313  ;;  %v1777_v63 = vadd.f32 %v3914_v59, %v1706_v38  ;;  %v1605_v52 = vmul.f32 %v2654_v27, %v3747_v16  ;;  %2663 = vrsqrt.f32 %v1482_v30  ;;  %v1450_v34 = vmul.f32 0.020408163, %v1380_v42 }
 0x355   : > { %1812 = vst [vmem:[%s3925_s8 + $0xa8] sm:$0xff] %v1748_v51  ;;  %v1709_v13 = vmul.f32 %v3908_v21, %v1638_v15  ;;  %2665 = vrsqrt.f32 %v1511_v6  ;;  %v1417_v8 = vmul.f32 0.020408163, %v1314_v28 }
 0x356   : > { %v2656_v20 = vpop.eup %2655  ;;  %1841 = vst [vmem:[%s3925_s8 + $0x190] sm:$0xff] %v1777_v63  ;;  %v1676_v39 = vmul.f32 %v3908_v21, %v1605_v52  ;;  %v1514_v22 = vadd.f32 1e-06, %v1450_v34 }
 0x357   : > { %v2658_v18 = vpop.eup %2657  ;;  %v1780_v10 = vadd.f32 %v3914_v59, %v1709_v13  ;;  %v1608_v44 = vmul.f32 %v2656_v20, %v3767_v46  ;;  %v1481_v16 = vadd.f32 1e-06, %v1417_v8  ;;  %v1320_v11 = vpop.xlane.xlu1 %1319 }
 0x358   : > { %v1378_v55 = vpop.xlane.xlu0 %1377  ;;  %v1747_v36 = vadd.f32 %v3914_v59, %v1676_v39  ;;  %v1637_v17 = vmul.f32 %v2658_v18, %v3761_v29  ;;  %2667 = vrsqrt.f32 %v1514_v22  ;;  %v1420_v47 = vmul.f32 0.020408163, %v1320_v11 }
 0x359   : > { %1844 = vst [vmem:[%s3925_s8 + $0x1a8] sm:$0xff] %v1780_v10  ;;  %v1679_v40 = vmul.f32 %v3908_v21, %v1608_v44  ;;  %2669 = vrsqrt.f32 %v1481_v16  ;;  %v1449_v4 = vmul.f32 0.020408163, %v1378_v55 }
 0x35a   : > { %v2660_v56 = vpop.eup %2659  ;;  %1811 = vst [vmem:[%s3925_s8 + $0xa0] sm:$0xff] %v1747_v36  ;;  %v1708_v5 = vmul.f32 %v3908_v21, %v1637_v17  ;;  %v1484_v46 = vadd.f32 1e-06, %v1420_v47 }
 0x35b   : > { %v2662_v58 = vpop.eup %2661  ;;  %v1750_v32 = vadd.f32 %v3914_v59, %v1679_v40  ;;  %v1640_v24 = vmul.f32 %v2660_v56, %v3781_v23  ;;  %v1513_v29 = vadd.f32 1e-06, %v1449_v4  ;;  %v1384_v37 = vpop.xlane.xlu1 %1383  ;;  %v4348_v56 = vld [vmem:[#allocation19_spill] sm:$0xff] }
 0x35c   : > { %v1318_v3 = vpop.xlane.xlu0 %1317  ;;  %v1779_v0 = vadd.f32 %v3914_v59, %v1708_v5  ;;  %v1607_v12 = vmul.f32 %v2662_v58, %v3775_v49  ;;  %2671 = vrsqrt.f32 %v1484_v46  ;;  %v1452_v14 = vmul.f32 0.020408163, %v1384_v37 }
 0x35d   : > { %1814 = vst [vmem:[%s3925_s8 + $0xb8] sm:$0xff] %v1750_v32  ;;  %v1711_v26 = vmul.f32 %v3908_v21, %v1640_v24  ;;  %2673 = vrsqrt.f32 %v1513_v29  ;;  %v1419_v31 = vmul.f32 0.020408163, %v1318_v3  ;;  %v4349_v24 = vld [vmem:[#allocation18_spill] sm:$0xff] }
 0x35e   : > { %v2664_v61 = vpop.eup %2663  ;;  %1843 = vst [vmem:[%s3925_s8 + $0x1a0] sm:$0xff] %v1779_v0  ;;  %v1678_v54 = vmul.f32 %v3908_v21, %v1607_v12  ;;  %v1516_v23 = vadd.f32 1e-06, %v1452_v14 }
 0x35f   : > { %v2666_v62 = vpop.eup %2665  ;;  %v1782_v41 = vadd.f32 %v3914_v59, %v1711_v26  ;;  %v1610_v60 = vmul.f32 %v2664_v61, %v3795_v57  ;;  %v1483_v49 = vadd.f32 1e-06, %v1419_v31  ;;  %v1324_v7 = vpop.xlane.xlu1 %1323 }
 0x360   : > { %v1382_v33 = vpop.xlane.xlu0 %1381  ;;  %v1749_v25 = vadd.f32 %v3914_v59, %v1678_v54  ;;  %v1639_v19 = vmul.f32 %v2666_v62, %v3789_v50  ;;  %2675 = vrsqrt.f32 %v1516_v23  ;;  %v1422_v53 = vmul.f32 0.020408163, %v1324_v7  ;;  %v4350_v54 = vld [vmem:[#allocation21_spill] sm:$0xff] }
 0x361   : > { %1846 = vst [vmem:[%s3925_s8 + $0x1b8] sm:$0xff] %v1782_v41  ;;  %v1681_v35 = vmul.f32 %v3908_v21, %v1610_v60  ;;  %2677 = vrsqrt.f32 %v1483_v49  ;;  %v1451_v45 = vmul.f32 0.020408163, %v1382_v33  ;;  %v4351_v49 = vld [vmem:[#allocation20_spill] sm:$0xff] }
 0x362   : > { %v2668_v9 = vpop.eup %2667  ;;  %1813 = vst [vmem:[%s3925_s8 + $0xb0] sm:$0xff] %v1749_v25  ;;  %v1710_v38 = vmul.f32 %v3908_v21, %v1639_v19  ;;  %v1486_v57 = vadd.f32 1e-06, %v1422_v53  ;;  %v2697_v53 = vld [vmem:[%s4229_s3] ss:$0 sm:$0xff] }
 0x363   : > { %v2670_v30 = vpop.eup %2669  ;;  %v1752_v27 = vadd.f32 %v3914_v59, %v1681_v35  ;;  %v1642_v51 = vmul.f32 %v2668_v9, %v3809_v48  ;;  %v1515_v50 = vadd.f32 1e-06, %v1451_v45  ;;  %v1388_v15 = vpop.xlane.xlu1 %1387 }
 0x364   : > { %v1322_v6 = vpop.xlane.xlu0 %1321  ;;  %v1781_v42 = vadd.f32 %v3914_v59, %v1710_v38  ;;  %v1609_v28 = vmul.f32 %v2670_v30, %v3803_v1  ;;  %2679 = vrsqrt.f32 %v1486_v57  ;;  %v1454_v63 = vmul.f32 0.020408163, %v1388_v15  ;;  %v4352_v57 = vld [vmem:[#allocation23_spill] sm:$0xff] }
 0x365   : > { %1816 = vst [vmem:[%s3925_s8 + $0xc8] sm:$0xff] %v1752_v27  ;;  %v1713_v52 = vmul.f32 %v3908_v21, %v1642_v51  ;;  %2681 = vrsqrt.f32 %v1515_v50  ;;  %v1421_v34 = vmul.f32 0.020408163, %v1322_v6  ;;  %v4353_v27 = vld [vmem:[#allocation22_spill] sm:$0xff] }
 0x366   : > { %v2672_v13 = vpop.eup %2671  ;;  %1845 = vst [vmem:[%s3925_s8 + $0x1b0] sm:$0xff] %v1781_v42  ;;  %v1680_v8 = vmul.f32 %v3908_v21, %v1609_v28  ;;  %v1518_v48 = vadd.f32 1e-06, %v1454_v63  ;;  %v4354_v63 = vld [vmem:[#allocation25_spill] sm:$0xff] }
 0x367   : > { %v2674_v20 = vpop.eup %2673  ;;  %v1784_v39 = vadd.f32 %v3914_v59, %v1713_v52  ;;  %v1612_v22 = vmul.f32 %v2672_v13, %v3823_v43  ;;  %v1485_v1 = vadd.f32 1e-06, %v1421_v34  ;;  %v1328_v18 = vpop.xlane.xlu1 %1327  ;;  %v4355_v13 = vld [vmem:[#allocation24_spill] sm:$0xff] }
 0x368   : > { %v1386_v10 = vpop.xlane.xlu0 %1385  ;;  %v1751_v44 = vadd.f32 %v3914_v59, %v1680_v8  ;;  %v1641_v16 = vmul.f32 %v2674_v20, %v3817_v2  ;;  %2683 = vrsqrt.f32 %v1518_v48  ;;  %v1424_v11 = vmul.f32 0.020408163, %v1328_v18  ;;  %v4356_v18 = vld [vmem:[#allocation27_spill] sm:$0xff] }
 0x369   : > { %1848 = vst [vmem:[%s3925_s8 + $0x1c8] sm:$0xff] %v1784_v39  ;;  %v1683_v55 = vmul.f32 %v3908_v21, %v1612_v22  ;;  %2685 = vrsqrt.f32 %v1485_v1  ;;  %v1453_v36 = vmul.f32 0.020408163, %v1386_v10 }
 0x36a   : > { %v2676_v17 = vpop.eup %2675  ;;  %1815 = vst [vmem:[%s3925_s8 + $0xc0] sm:$0xff] %v1751_v44  ;;  %v1712_v47 = vmul.f32 %v3908_v21, %v1641_v16  ;;  %v1488_v43 = vadd.f32 1e-06, %v1424_v11  ;;  %v4357_v16 = vld [vmem:[#allocation26_spill] sm:$0xff] }
 0x36b   : > { %v2678_v40 = vpop.eup %2677  ;;  %v1754_v4 = vadd.f32 %v3914_v59, %v1683_v55  ;;  %v1644_v5 = vmul.f32 %v2676_v17, %v4348_v56  ;;  %v1517_v2 = vadd.f32 1e-06, %v1453_v36  ;;  %v1392_v46 = vpop.xlane.xlu1 %1391 }
 0x36c   : > { %v1326_v58 = vpop.xlane.xlu0 %1325  ;;  %v1783_v32 = vadd.f32 %v3914_v59, %v1712_v47  ;;  %v1611_v29 = vmul.f32 %v2678_v40, %v4349_v24  ;;  %2687 = vrsqrt.f32 %v1488_v43  ;;  %v1456_v37 = vmul.f32 0.020408163, %v1392_v46  ;;  %v4358_v43 = vld [vmem:[#allocation28_spill] sm:$0xff] }
 0x36d   : > { %1818 = vst [vmem:[%s3925_s8 + $0xd8] sm:$0xff] %v1754_v4  ;;  %v1715_v3 = vmul.f32 %v3908_v21, %v1644_v5  ;;  %2689 = vrsqrt.f32 %v1517_v2  ;;  %v1423_v0 = vmul.f32 0.020408163, %v1326_v58 }
 0x36e   : > { %v2680_v12 = vpop.eup %2679  ;;  %1847 = vst [vmem:[%s3925_s8 + $0x1c0] sm:$0xff] %v1783_v32  ;;  %v1682_v14 = vmul.f32 %v3908_v21, %v1611_v29  ;;  %v1520_v26 = vadd.f32 1e-06, %v1456_v37 }
 0x36f   : > { %v2682_v31 = vpop.eup %2681  ;;  %v1786_v61 = vadd.f32 %v3914_v59, %v1715_v3  ;;  %v1614_v23 = vmul.f32 %v2680_v12, %v4350_v54  ;;  %v1487_v62 = vadd.f32 1e-06, %v1423_v0 }
 0x370   : > { %v1390_v41 = vpop.xlane.xlu0 %1389  ;;  %v1753_v60 = vadd.f32 %v3914_v59, %v1682_v14  ;;  %v1643_v7 = vmul.f32 %v2682_v31, %v4351_v49  ;;  %2691 = vrsqrt.f32 %v1520_v26  ;;  %v2698_v59 = vld [vmem:[%s4230_s4] ss:$0 sm:$0xff] }
 0x371   : > { %v1455_v33 = vmul.f32 0.020408163, %v1390_v41  ;;  %1850 = vst [vmem:[%s3925_s8 + $0x1d8] sm:$0xff] %v1786_v61  ;;  %v1685_v25 = vmul.f32 %v3908_v21, %v1614_v23  ;;  %2693 = vrsqrt.f32 %v1487_v62 }
 0x372   : > { %v2684_v19 = vpop.eup %2683  ;;  %1817 = vst [vmem:[%s3925_s8 + $0xd0] sm:$0xff] %v1753_v60  ;;  %v1714_v35 = vmul.f32 %v2697_v53, %v1643_v7 }
 0x373   : > { %v1519_v45 = vadd.f32 1e-06, %v1455_v33  ;;  %v2686_v9 = vpop.eup %2685  ;;  %v1756_v38 = vadd.f32 %v2698_v59, %v1685_v25  ;;  %v1646_v30 = vmul.f32 %v2684_v19, %v4352_v57 }
 0x374   : > { %v1785_v21 = vadd.f32 %v2698_v59, %v1714_v35  ;;  %v1613_v51 = vmul.f32 %v2686_v9, %v4353_v27 }
 0x375   : > { %2695 = vrsqrt.f32 %v1519_v45  ;;  %1820 = vst [vmem:[%s3925_s8 + $0xe8] sm:$0xff] %v1756_v38  ;;  %v1717_v50 = vmul.f32 %v2697_v53, %v1646_v30 }
 0x376   : > { %v2688_v15 = vpop.eup %2687  ;;  %1849 = vst [vmem:[%s3925_s8 + $0x1d0] sm:$0xff] %v1785_v21  ;;  %v1684_v6 = vmul.f32 %v2697_v53, %v1613_v51 }
 0x377   : > { %v2690_v42 = vpop.eup %2689  ;;  %v1788_v28 = vadd.f32 %v2698_v59, %v1717_v50  ;;  %v1616_v52 = vmul.f32 %v2688_v15, %v4354_v63 }
 0x378   : > { %v1755_v34 = vadd.f32 %v2698_v59, %v1684_v6  ;;  %v1645_v8 = vmul.f32 %v2690_v42, %v4355_v13 }
 0x379   : > { %1852 = vst [vmem:[%s3925_s8 + $0x1e8] sm:$0xff] %v1788_v28  ;;  %v1687_v48 = vmul.f32 %v2697_v53, %v1616_v52 }
 0x37a   : > { %v2692_v20 = vpop.eup %2691  ;;  %1819 = vst [vmem:[%s3925_s8 + $0xe0] sm:$0xff] %v1755_v34  ;;  %v1716_v39 = vmul.f32 %v2697_v53, %v1645_v8 }
 0x37b   : > { %v2694_v22 = vpop.eup %2693  ;;  %v1758_v1 = vadd.f32 %v2698_v59, %v1687_v48  ;;  %v1648_v10 = vmul.f32 %v2692_v20, %v4356_v18 }
 0x37c   : > { %v1787_v44 = vadd.f32 %v2698_v59, %v1716_v39  ;;  %v1615_v11 = vmul.f32 %v2694_v22, %v4357_v16 }
 0x37d   : > { %1822 = vst [vmem:[%s3925_s8 + $0xf8] sm:$0xff] %v1758_v1  ;;  %v1719_v55 = vmul.f32 %v2697_v53, %v1648_v10 }
 0x37e   : > { %1851 = vst [vmem:[%s3925_s8 + $0x1e0] sm:$0xff] %v1787_v44  ;;  %v1686_v17 = vmul.f32 %v2697_v53, %v1615_v11 }
 0x37f   : > { %v2696_v36 = vpop.eup %2695  ;;  %v1790_v47 = vadd.f32 %v2698_v59, %v1719_v55 }
 0x380   : > { %v1647_v40 = vmul.f32 %v2696_v36, %v4358_v43  ;;  %v1757_v4 = vadd.f32 %v2698_v59, %v1686_v17 }
 0x381   : > { %1854 = vst [vmem:[%s3925_s8 + $0x1f8] sm:$0xff] %v1790_v47 }
 0x382   : > { %v1718_v56 = vmul.f32 %v2697_v53, %v1647_v40  ;;  %1821 = vst [vmem:[%s3925_s8 + $0xf0] sm:$0xff] %v1757_v4 }
 0x384   : > { %v1789_v5 = vadd.f32 %v2698_v59, %v1718_v56 }
 0x386   : > { %1853 = vst [vmem:[%s3925_s8 + $0x1f0] sm:$0xff] %v1789_v5 }
 0x387   : > { %2770 = shalt.err (!%p2767_p9)
}
 0x388   : > { %s2771_s15 = scalar_lea.hbm %s4169_s1, 8192  ;;  %s2775_s26 = scalar_lea.hbm %s4359_s28, 32768 }
 0x389   : > { %p2772_p2 = scmp.ne.s32.totalorder %s4169_s1, %s2771_s15  ;;  %p2776_p1 = scmp.lt.u32.totalorder %s4169_s1, %s4359_s28 }
 0x38a   : > { %p2777_p4 = scmp.lt.u32.totalorder %s2775_s26, %s2771_s15  ;;  %p2779_p11 = scmp.lt.u32.totalorder %s2771_s15, %s4169_s1 }
 0x38b   : > { %p2773_p6 = pnand %p2772_p2, %p4360_p13 }
 0x38c   : > { %p2778_p12 = por %p2777_p4, %p2776_p1 }
 0x38d   : > { %p2774_p10 = pneg %p2773_p6 }
 0x38e   : > { %p2780_p5 = por %p2779_p11, %p2778_p12 }
 0x390   : > { %p2781_p0 = pnand %p2780_p5, %p2774_p10 }
 0x392   : > { %2784 = shalt.err (!%p2781_p0)
}
 0x393   : > { %s2869_s14 = smov 128   ;;  %s2870_s16 = smov 8  }
 0x394   : > { %2255 = dma.vmem_to_hbm [thread:$0]  (%p4360_p13), %s4171_s22, 8192, %s4169_s1, %s1856_s5, %s2869_s14, %s2869_s14, %s2870_s16  }
 0x395 PF: > { %s4361_s17 = sld [smem:[#allocation13_spill]]  ;;  %s4362_s21 = sld [smem:[#allocation11_spill]] }
 0x396   : > { %s4363_s30 = sld [smem:[#allocation14_spill]] }
 0x39b   : > { %p2272_p3 = scmp.ge.s32.totalorder %s4361_s17, 2  ;;  %s1886_s25 = sand.u32 1, %s4362_s21  }
 0x39c   : > { %p4364_p7 = scmp.ne.s32.totalorder %s4363_s30, 0  ;;  %s1887_s29 = scalar_lea.sflag [#allocation4], %s1886_s25 }
 0x39e   : > { %p2266_p8 = pnand %p2272_p3, %p4364_p7 }
 0x3a0   : > { %2826 = dma.done.wait (!%p2266_p8), %s1887_s29, 8192  }
 0x3a1   : > { %2828 = vsyncadd (!%p2266_p8), %s1887_s29, 4294959104  ;;  %s22_s25 = sadd.s32 1, %s4361_s17   ;;  %s4365_s21 = sld [smem:[#allocation12_spill]] }
 0x3a2   : > { %p19_p9 = scmp.ge.s32.totalorder %s22_s25, 6   ;;  %s4366_s7 = sld [smem:[#allocation15_spill]] }
 0x3a3   : > { %s4367_s18 = smov %s2835_s19  ;;  %s4368_s19 = smov %s2839_s20 }
 0x3a4   : > { %s4369_s20 = smov %s3032_s23  ;;  %s4370_s22 = smov %s2855_s24 }
 0x3a5   : > { %s4372_s24 = smov %s4378_s27  ;;  %21 = sbr.rel (!%p19_p9) target bundleno = 11 (0xb), region = 89 }
 0x3a8   : > { %s4371_s23 = smov %s4366_s7 }
 0x3ac   :  { %1892 = vsyncpa [#allocation3], 1 }
 0x3ad   :  { %1894 = vsyncpa [#allocation3 + $0x1], 1 }
 0x3ae   :  { %1895 = vsyncpa [#allocation6], 1 }
 0x3af   :  { %1896 = vsyncpa [#allocation4], 1 }
 0x3b0   :  { %1898 = vsyncpa [#allocation4 + $0x1], 1 }

</bundles_post_ra>
